<compile_context>
chip_gen: v6e
topology: v6e:2x2x1
jax: 0.10.0
libtpu: 0.0.40
codegen_flags: <defaults>
</compile_context>

<pallas_src>
import jax
import jax.numpy as jnp
from jax import lax
from jax.experimental import pallas as pl
from jax.experimental.pallas import tpu as pltpu


# ----------------------------- small host-side helpers ------------------------------

def _cdiv(a, b):
    return -(-a // b)


def _round_up(x, m):
    return _cdiv(x, m) * m


def _num_tensorcores():
    """Best-effort TensorCore count of the local device (v7x/v4/v5p-style: 2, else 1)."""
    try:
        d = jax.devices()[0]
        for attr in ("num_cores", "core_count"):
            v = getattr(d, attr, None)
            if isinstance(v, int) and 0 < v <= 8:
                return v
        kind = str(getattr(d, "device_kind", "")).lower()
        if any(tag in kind for tag in ("v7", "v4", "v5p")):
            return 2
    except Exception:
        pass
    return 1


def _build_layer_meta(params, feature_sizes, L0, C_in):
    meta = []
    lin = L0
    cin_k = C_in                    # contraction width as seen by the kernel
    n_layers = len(params)
    for idx, layer in enumerate(params):
        w = layer[0]
        c_out, _, k = w.shape
        cp = _round_up(c_out, 128)  # lane-dense output channels
        meta.append(dict(Lin=lin, K=k, F=feature_sizes[idx], Cp=cp,
                         Cin_k=cin_k, C_out=c_out,
                         apply_act=(idx != n_layers - 1)))
        lin = feature_sizes[idx]    # next layer's length is this layer's pooled size
        cin_k = cp                  # padded channel layout flows to the next layer
    return meta


def _weight_bytes(meta):
    total = 0
    for m in meta:
        total += m["K"] * m["Cin_k"] * m["Cp"] * 2      # bf16 packed taps
        total += 2 * m["Cp"] * 4                        # f32 scale + shift
    return total


_VMEM_EST_BUDGET = 16 * 1024 * 1024   # keep the per-block estimate under every gen's default


def _vmem_bytes_for_block(nb, meta):
    m0, ml = meta[0], meta[-1]
    total = 2 * nb * (m0["Lin"] + m0["K"] - 1) * m0["Cin_k"] * 2   # double-buffered input blk
    total += 2 * nb * ml["F"] * ml["Cp"] * 4                       # double-buffered output blk
    live = 0
    for m in meta:
        live = max(live,
                   nb * (m["Lin"] + m["K"] - 1) * m["Cin_k"] * 2   # halo-padded bf16 input
                   + nb * m["Lin"] * m["Cp"] * 4                   # f32 matmul result
                   + nb * m["F"] * m["Cp"] * 4)                    # pooled result
    return total + live + _weight_bytes(meta)


def _choose_batch_block(N, meta):
    L0 = meta[0]["Lin"]
    nb = max(1, min(N, _cdiv(512, L0)))          # feed the MXU M-dim with >= 512 rows per dot
    while nb > 1 and _vmem_bytes_for_block(nb, meta) > _VMEM_EST_BUDGET:
        nb = _cdiv(nb, 2)                        # clamp to the VMEM budget
    g = max(_cdiv(N, nb), min(N, _num_tensorcores()))   # keep every TensorCore busy
    nb = _cdiv(N, g)                                    # balanced blocks -> minimal padding
    g = _cdiv(N, nb)
    return nb, g


# ----------------------------------- fused kernel -----------------------------------

def _make_fused_kernel(NB, meta):
    n_layers = len(meta)

    def kernel(*refs):
        x_ref, out_ref = refs[0], refs[-1]
        h = x_ref[...]                                   # (NB, Lin0+K0-1, C_in) bf16
        for i, m in enumerate(meta):
            w_ref, sc_ref, sh_ref = refs[1 + 3 * i: 4 + 3 * i]
            Lin, K, F, Cp = m["Lin"], m["K"], m["F"], m["Cp"]
            Cc = h.shape[-1]
            # Conv1d('same'): in-VMEM im2col as K accumulating MXU dots (bf16 -> f32 acc).
            acc = None
            for k in range(K):
                xk = h[:, k:k + Lin, :].reshape(NB * Lin, Cc)
                d = jnp.dot(xk, w_ref[k], preferred_element_type=jnp.float32)
                acc = d if acc is None else acc + d
            # Conv bias + BatchNorm (inference, running stats) folded into f32 scale/shift.
            y = acc * sc_ref[...] + sh_ref[...]
            if m["apply_act"]:                           # ReLU (skipped on the last layer)
                y = jnp.maximum(y, 0.0)
            # Dropout: identity at inference.
            y3 = y.reshape(NB, Lin, Cp)
            # AdaptiveMaxPool1d(Lin -> F), fully in registers (no scratch round trip).
            parts = []
            for fi in range(F):
                s = (fi * Lin) // F
                e = _cdiv((fi + 1) * Lin, F)
                parts.append(jnp.max(y3[:, s:e, :], axis=1, keepdims=True))
            if i == n_layers - 1:
                out_ref[...] = jnp.concatenate(parts, axis=1).astype(out_ref.dtype)
            else:
                # Hand off to the next layer entirely in VMEM: add the zero halo rows for
                # its 'same' padding (lane-padded channels are already exactly zero).
                kn = meta[i + 1]["K"]
                pl_n, pr_n = (kn - 1) // 2, kn // 2
                pieces = []
                if pl_n:
                    pieces.append(jnp.zeros((NB, pl_n, Cp), jnp.float32))
                pieces.extend(parts)
                if pr_n:
                    pieces.append(jnp.zeros((NB, pr_n, Cp), jnp.float32))
                h = jnp.concatenate(pieces, axis=1).astype(jnp.bfloat16)

    return kernel


# ----------------------------------- host wrapper ------------------------------------

def pogacnn_forward(x_ncl, params, feature_sizes, eps=1e-5):
    """x_ncl: (N, C_in, L) PyTorch layout.  Returns (N, C_out_last, F_last)."""
    N, C_in, L0 = x_ncl.shape
    meta = _build_layer_meta(params, feature_sizes, L0, C_in)

    # ---- pack weights (tap-major, channel-padded) and fold conv bias + BN (inference) ----
    packed = []
    cin_k = C_in
    for (w, b, gamma, beta, mean, var), m in zip(params, meta):
        c_out, c_in_real, _ = w.shape
        cp = m["Cp"]
        wt = jnp.transpose(w, (2, 1, 0))                              # (K, C_in, C_out)
        wt = jnp.pad(wt, ((0, 0), (0, cin_k - c_in_real), (0, cp - c_out)))
        inv = gamma / jnp.sqrt(var + eps)
        scale = jnp.pad(inv, (0, cp - c_out))[None, :].astype(jnp.float32)
        shift = jnp.pad((b - mean) * inv + beta, (0, cp - c_out))[None, :].astype(jnp.float32)
        packed.append((wt.astype(jnp.bfloat16), scale, shift))
        cin_k = cp

    NB, G = _choose_batch_block(N, meta)
    Np = G * NB

    K0 = meta[0]["K"]
    pad_l0, pad_r0 = (K0 - 1) // 2, K0 // 2
    # NCL -> NLC once; add the layer-0 'same' halo and batch padding; cast to bf16.
    x_blk = jnp.pad(jnp.transpose(x_ncl, (0, 2, 1)),
                    ((0, Np - N), (pad_l0, pad_r0), (0, 0))).astype(jnp.bfloat16)

    F_last, Cp_last = meta[-1]["F"], meta[-1]["Cp"]
    in_specs = [pl.BlockSpec((NB, L0 + K0 - 1, C_in), lambda n: (n, 0, 0))]
    args = [x_blk]
    for wt, scale, shift in packed:                       # weights stay VMEM-resident
        in_specs.append(pl.BlockSpec(wt.shape, lambda n: (0, 0, 0)))
        in_specs.append(pl.BlockSpec(scale.shape, lambda n: (0, 0)))
        in_specs.append(pl.BlockSpec(shift.shape, lambda n: (0, 0)))
        args += [wt, scale, shift]

    out = pl.pallas_call(
        _make_fused_kernel(NB, meta),
        out_shape=jax.ShapeDtypeStruct((Np, F_last, Cp_last), jnp.float32),
        grid=(G,),
        in_specs=in_specs,
        out_specs=pl.BlockSpec((NB, F_last, Cp_last), lambda n: (n, 0, 0)),
        compiler_params=pltpu.CompilerParams(
            dimension_semantics=("parallel",),
            vmem_limit_bytes=32 * 1024 * 1024),
    )(*args)

    c_out_last = meta[-1]["C_out"]
    return jnp.transpose(out[:N, :, :c_out_last], (0, 2, 1))   # strip padding, back to NCL


# --------------------------------- pure-JAX reference --------------------------------

def pogacnn_reference(x, params, feature_sizes, eps=1e-5):
    """Pure-JAX reference matching the PyTorch forward (inference mode).

    Conv inputs/weights are cast to bf16 with f32 accumulation, mirroring the kernel's
    single-pass MXU precision, so the comparison isolates the kernel logic.
    """
    n_layers = len(params)
    for idx, (w, b, gamma, beta, mean, var) in enumerate(params):
        K = w.shape[-1]
        pad_l, pad_r = (K - 1) // 2, K // 2
        y = lax.conv_general_dilated(
            x.astype(jnp.bfloat16), w.astype(jnp.bfloat16),
            window_strides=(1,), padding=[(pad_l, pad_r)],
            dimension_numbers=("NCH", "OIH", "NCH"),
            preferred_element_type=jnp.float32) + b[None, :, None]
        y = ((y - mean[None, :, None]) / jnp.sqrt(var + eps)[None, :, None]
             * gamma[None, :, None] + beta[None, :, None])
        if idx != n_layers - 1:
            y = jnp.maximum(y, 0.0)
        F_ = feature_sizes[idx]
        L = y.shape[-1]
        cols = []
        for i in range(F_):
            s = (i * L) // F_
            e = _cdiv((i + 1) * L, F_)
            cols.append(jnp.max(y[:, :, s:e], axis=-1, keepdims=True))
        x = jnp.concatenate(cols, axis=-1)
    return x


# --------------------------------------- main ----------------------------------------

if __name__ == "__main__":
    key = jax.random.PRNGKey(0)
    N, C_in, L = 2, 4, 64
    out_channels = [20, 16]
    feature_size = [32, 8]
    kernel_size = [3, 5]

    keys = jax.random.split(key, 1 + 6 * len(out_channels))
    x = jax.random.normal(keys[0], (N, C_in, L), dtype=jnp.float32)

    params = []
    c_prev = C_in
    for idx, (c_out, ksz) in enumerate(zip(out_channels, kernel_size)):
        kw, kb, kg, kbt, km, kv = keys[1 + 6 * idx: 1 + 6 * (idx + 1)]
        fan_in = c_prev * ksz
        w = jax.random.normal(kw, (c_out, c_prev, ksz), jnp.float32) / jnp.sqrt(fan_in)
        b = 0.1 * jax.random.normal(kb, (c_out,), jnp.float32)
        gamma = 1.0 + 0.1 * jax.random.normal(kg, (c_out,), jnp.float32)
        beta = 0.1 * jax.random.normal(kbt, (c_out,), jnp.float32)
        mean = 0.1 * jax.random.normal(km, (c_out,), jnp.float32)
        var = jax.random.uniform(kv, (c_out,), jnp.float32, minval=0.5, maxval=1.5)
        params.append((w, b, gamma, beta, mean, var))
        c_prev = c_out

    fwd = jax.jit(lambda inp: pogacnn_forward(inp, params, feature_size))
    out = jax.block_until_ready(fwd(x))

    ref = pogacnn_reference(x, params, feature_size)
    assert out.shape == (N, out_channels[-1], feature_size[-1]), out.shape
    err = float(jnp.max(jnp.abs(out - ref)))
    assert jnp.allclose(out, ref, rtol=2e-3, atol=2e-3), err
    print("KERNEL_OK")
</pallas_src>

<mosaic_0001>
module attributes {stable_mosaic.version = 11 : i64} {
  func.func @kernel(%arg0: i32, %arg1: memref<2x66x4xbf16, #tpu.memory_space<vmem>>, %arg2: memref<3x4x128xbf16, #tpu.memory_space<vmem>>, %arg3: memref<1x128xf32, #tpu.memory_space<vmem>>, %arg4: memref<1x128xf32, #tpu.memory_space<vmem>>, %arg5: memref<5x128x128xbf16, #tpu.memory_space<vmem>>, %arg6: memref<1x128xf32, #tpu.memory_space<vmem>>, %arg7: memref<1x128xf32, #tpu.memory_space<vmem>>, %arg8: memref<2x8x128xf32, #tpu.memory_space<vmem>>) attributes {dimension_semantics = [#tpu.dimension_semantics<parallel>], iteration_bounds = array<i64: 1>, scalar_prefetch = 0 : i64, scratch_operands = 0 : i64, tpu.core_type = #tpu.core_type<tc>, window_params = [{transform_indices = @transform_0, window_bounds = array<i64: 2, 66, 4>}, {pipeline_mode = #tpu.pipeline_mode<synchronous>, transform_indices = @transform_1, window_bounds = array<i64: 3, 4, 128>}, {pipeline_mode = #tpu.pipeline_mode<synchronous>, transform_indices = @transform_2, window_bounds = array<i64: 1, 128>}, {pipeline_mode = #tpu.pipeline_mode<synchronous>, transform_indices = @transform_3, window_bounds = array<i64: 1, 128>}, {pipeline_mode = #tpu.pipeline_mode<synchronous>, transform_indices = @transform_4, window_bounds = array<i64: 5, 128, 128>}, {pipeline_mode = #tpu.pipeline_mode<synchronous>, transform_indices = @transform_5, window_bounds = array<i64: 1, 128>}, {pipeline_mode = #tpu.pipeline_mode<synchronous>, transform_indices = @transform_6, window_bounds = array<i64: 1, 128>}, {transform_indices = @transform_7, window_bounds = array<i64: 2, 8, 128>}]} {
    %c0 = arith.constant 0 : index
    %c0_0 = arith.constant 0 : index
    %c0_1 = arith.constant 0 : index
    %0 = vector.load %arg1[%c0, %c0_0, %c0_1] : memref<2x66x4xbf16, #tpu.memory_space<vmem>>, vector<2x66x4xbf16>
    %1 = vector.extract_strided_slice %0 {offsets = [0, 0, 0], sizes = [2, 64, 4], strides = [1, 1, 1]} : vector<2x66x4xbf16> to vector<2x64x4xbf16>
    %2 = vector.shape_cast %1 : vector<2x64x4xbf16> to vector<128x4xbf16>
    %c0_2 = arith.constant 0 : index
    %c0_3 = arith.constant 0 : index
    %c0_4 = arith.constant 0 : index
    %3 = vector.load %arg2[%c0_2, %c0_3, %c0_4] : memref<3x4x128xbf16, #tpu.memory_space<vmem>>, vector<1x4x128xbf16>
    %4 = vector.shape_cast %3 : vector<1x4x128xbf16> to vector<4x128xbf16>
    %cst = arith.constant dense<0.000000e+00> : vector<128x128xf32>
    %5 = tpu.matmul %2, %4, %cst {dimension_numbers = #tpu.dot_dimension_numbers<[1], [0], [0], [1], [0, 0, 1, 1], [], []>} : vector<128x4xbf16>, vector<4x128xbf16>, vector<128x128xf32> -> vector<128x128xf32>
    %6 = vector.extract_strided_slice %0 {offsets = [0, 1, 0], sizes = [2, 64, 4], strides = [1, 1, 1]} : vector<2x66x4xbf16> to vector<2x64x4xbf16>
    %7 = vector.shape_cast %6 : vector<2x64x4xbf16> to vector<128x4xbf16>
    %c1 = arith.constant 1 : index
    %c0_5 = arith.constant 0 : index
    %c0_6 = arith.constant 0 : index
    %8 = vector.load %arg2[%c1, %c0_5, %c0_6] : memref<3x4x128xbf16, #tpu.memory_space<vmem>>, vector<1x4x128xbf16>
    %9 = vector.shape_cast %8 : vector<1x4x128xbf16> to vector<4x128xbf16>
    %cst_7 = arith.constant dense<0.000000e+00> : vector<128x128xf32>
    %10 = tpu.matmul %7, %9, %cst_7 {dimension_numbers = #tpu.dot_dimension_numbers<[1], [0], [0], [1], [0, 0, 1, 1], [], []>} : vector<128x4xbf16>, vector<4x128xbf16>, vector<128x128xf32> -> vector<128x128xf32>
    %11 = arith.addf %5, %10 : vector<128x128xf32>
    %12 = vector.extract_strided_slice %0 {offsets = [0, 2, 0], sizes = [2, 64, 4], strides = [1, 1, 1]} : vector<2x66x4xbf16> to vector<2x64x4xbf16>
    %13 = vector.shape_cast %12 : vector<2x64x4xbf16> to vector<128x4xbf16>
    %c2 = arith.constant 2 : index
    %c0_8 = arith.constant 0 : index
    %c0_9 = arith.constant 0 : index
    %14 = vector.load %arg2[%c2, %c0_8, %c0_9] : memref<3x4x128xbf16, #tpu.memory_space<vmem>>, vector<1x4x128xbf16>
    %15 = vector.shape_cast %14 : vector<1x4x128xbf16> to vector<4x128xbf16>
    %cst_10 = arith.constant dense<0.000000e+00> : vector<128x128xf32>
    %16 = tpu.matmul %13, %15, %cst_10 {dimension_numbers = #tpu.dot_dimension_numbers<[1], [0], [0], [1], [0, 0, 1, 1], [], []>} : vector<128x4xbf16>, vector<4x128xbf16>, vector<128x128xf32> -> vector<128x128xf32>
    %17 = arith.addf %11, %16 : vector<128x128xf32>
    %c0_11 = arith.constant 0 : index
    %c0_12 = arith.constant 0 : index
    %18 = vector.load %arg3[%c0_11, %c0_12] : memref<1x128xf32, #tpu.memory_space<vmem>>, vector<1x128xf32>
    %19 = vector.broadcast %18 : vector<1x128xf32> to vector<128x128xf32>
    %20 = arith.mulf %17, %19 : vector<128x128xf32>
    %c0_13 = arith.constant 0 : index
    %c0_14 = arith.constant 0 : index
    %21 = vector.load %arg4[%c0_13, %c0_14] : memref<1x128xf32, #tpu.memory_space<vmem>>, vector<1x128xf32>
    %22 = vector.broadcast %21 : vector<1x128xf32> to vector<128x128xf32>
    %23 = arith.addf %20, %22 : vector<128x128xf32>
    %cst_15 = arith.constant 0.000000e+00 : f32
    %24 = vector.broadcast %cst_15 : f32 to vector<128x128xf32>
    %25 = arith.maximumf %23, %24 : vector<128x128xf32>
    %26 = vector.shape_cast %25 : vector<128x128xf32> to vector<2x64x128xf32>
    %27 = vector.extract_strided_slice %26 {offsets = [0, 0, 0], sizes = [2, 2, 128], strides = [1, 1, 1]} : vector<2x64x128xf32> to vector<2x2x128xf32>
    %cst_16 = arith.constant dense<0xFF800000> : vector<2x128xf32>
    %28 = vector.multi_reduction <maximumf>, %27, %cst_16 [1] : vector<2x2x128xf32> to vector<2x128xf32>
    %29 = vector.shape_cast %28 : vector<2x128xf32> to vector<2x1x128xf32>
    %30 = vector.extract_strided_slice %26 {offsets = [0, 2, 0], sizes = [2, 2, 128], strides = [1, 1, 1]} : vector<2x64x128xf32> to vector<2x2x128xf32>
    %cst_17 = arith.constant dense<0xFF800000> : vector<2x128xf32>
    %31 = vector.multi_reduction <maximumf>, %30, %cst_17 [1] : vector<2x2x128xf32> to vector<2x128xf32>
    %32 = vector.shape_cast %31 : vector<2x128xf32> to vector<2x1x128xf32>
    %33 = vector.extract_strided_slice %26 {offsets = [0, 4, 0], sizes = [2, 2, 128], strides = [1, 1, 1]} : vector<2x64x128xf32> to vector<2x2x128xf32>
    %cst_18 = arith.constant dense<0xFF800000> : vector<2x128xf32>
    %34 = vector.multi_reduction <maximumf>, %33, %cst_18 [1] : vector<2x2x128xf32> to vector<2x128xf32>
    %35 = vector.shape_cast %34 : vector<2x128xf32> to vector<2x1x128xf32>
    %36 = vector.extract_strided_slice %26 {offsets = [0, 6, 0], sizes = [2, 2, 128], strides = [1, 1, 1]} : vector<2x64x128xf32> to vector<2x2x128xf32>
    %cst_19 = arith.constant dense<0xFF800000> : vector<2x128xf32>
    %37 = vector.multi_reduction <maximumf>, %36, %cst_19 [1] : vector<2x2x128xf32> to vector<2x128xf32>
    %38 = vector.shape_cast %37 : vector<2x128xf32> to vector<2x1x128xf32>
    %39 = vector.extract_strided_slice %26 {offsets = [0, 8, 0], sizes = [2, 2, 128], strides = [1, 1, 1]} : vector<2x64x128xf32> to vector<2x2x128xf32>
    %cst_20 = arith.constant dense<0xFF800000> : vector<2x128xf32>
    %40 = vector.multi_reduction <maximumf>, %39, %cst_20 [1] : vector<2x2x128xf32> to vector<2x128xf32>
    %41 = vector.shape_cast %40 : vector<2x128xf32> to vector<2x1x128xf32>
    %42 = vector.extract_strided_slice %26 {offsets = [0, 10, 0], sizes = [2, 2, 128], strides = [1, 1, 1]} : vector<2x64x128xf32> to vector<2x2x128xf32>
    %cst_21 = arith.constant dense<0xFF800000> : vector<2x128xf32>
    %43 = vector.multi_reduction <maximumf>, %42, %cst_21 [1] : vector<2x2x128xf32> to vector<2x128xf32>
    %44 = vector.shape_cast %43 : vector<2x128xf32> to vector<2x1x128xf32>
    %45 = vector.extract_strided_slice %26 {offsets = [0, 12, 0], sizes = [2, 2, 128], strides = [1, 1, 1]} : vector<2x64x128xf32> to vector<2x2x128xf32>
    %cst_22 = arith.constant dense<0xFF800000> : vector<2x128xf32>
    %46 = vector.multi_reduction <maximumf>, %45, %cst_22 [1] : vector<2x2x128xf32> to vector<2x128xf32>
    %47 = vector.shape_cast %46 : vector<2x128xf32> to vector<2x1x128xf32>
    %48 = vector.extract_strided_slice %26 {offsets = [0, 14, 0], sizes = [2, 2, 128], strides = [1, 1, 1]} : vector<2x64x128xf32> to vector<2x2x128xf32>
    %cst_23 = arith.constant dense<0xFF800000> : vector<2x128xf32>
    %49 = vector.multi_reduction <maximumf>, %48, %cst_23 [1] : vector<2x2x128xf32> to vector<2x128xf32>
    %50 = vector.shape_cast %49 : vector<2x128xf32> to vector<2x1x128xf32>
    %51 = vector.extract_strided_slice %26 {offsets = [0, 16, 0], sizes = [2, 2, 128], strides = [1, 1, 1]} : vector<2x64x128xf32> to vector<2x2x128xf32>
    %cst_24 = arith.constant dense<0xFF800000> : vector<2x128xf32>
    %52 = vector.multi_reduction <maximumf>, %51, %cst_24 [1] : vector<2x2x128xf32> to vector<2x128xf32>
    %53 = vector.shape_cast %52 : vector<2x128xf32> to vector<2x1x128xf32>
    %54 = vector.extract_strided_slice %26 {offsets = [0, 18, 0], sizes = [2, 2, 128], strides = [1, 1, 1]} : vector<2x64x128xf32> to vector<2x2x128xf32>
    %cst_25 = arith.constant dense<0xFF800000> : vector<2x128xf32>
    %55 = vector.multi_reduction <maximumf>, %54, %cst_25 [1] : vector<2x2x128xf32> to vector<2x128xf32>
    %56 = vector.shape_cast %55 : vector<2x128xf32> to vector<2x1x128xf32>
    %57 = vector.extract_strided_slice %26 {offsets = [0, 20, 0], sizes = [2, 2, 128], strides = [1, 1, 1]} : vector<2x64x128xf32> to vector<2x2x128xf32>
    %cst_26 = arith.constant dense<0xFF800000> : vector<2x128xf32>
    %58 = vector.multi_reduction <maximumf>, %57, %cst_26 [1] : vector<2x2x128xf32> to vector<2x128xf32>
    %59 = vector.shape_cast %58 : vector<2x128xf32> to vector<2x1x128xf32>
    %60 = vector.extract_strided_slice %26 {offsets = [0, 22, 0], sizes = [2, 2, 128], strides = [1, 1, 1]} : vector<2x64x128xf32> to vector<2x2x128xf32>
    %cst_27 = arith.constant dense<0xFF800000> : vector<2x128xf32>
    %61 = vector.multi_reduction <maximumf>, %60, %cst_27 [1] : vector<2x2x128xf32> to vector<2x128xf32>
    %62 = vector.shape_cast %61 : vector<2x128xf32> to vector<2x1x128xf32>
    %63 = vector.extract_strided_slice %26 {offsets = [0, 24, 0], sizes = [2, 2, 128], strides = [1, 1, 1]} : vector<2x64x128xf32> to vector<2x2x128xf32>
    %cst_28 = arith.constant dense<0xFF800000> : vector<2x128xf32>
    %64 = vector.multi_reduction <maximumf>, %63, %cst_28 [1] : vector<2x2x128xf32> to vector<2x128xf32>
    %65 = vector.shape_cast %64 : vector<2x128xf32> to vector<2x1x128xf32>
    %66 = vector.extract_strided_slice %26 {offsets = [0, 26, 0], sizes = [2, 2, 128], strides = [1, 1, 1]} : vector<2x64x128xf32> to vector<2x2x128xf32>
    %cst_29 = arith.constant dense<0xFF800000> : vector<2x128xf32>
    %67 = vector.multi_reduction <maximumf>, %66, %cst_29 [1] : vector<2x2x128xf32> to vector<2x128xf32>
    %68 = vector.shape_cast %67 : vector<2x128xf32> to vector<2x1x128xf32>
    %69 = vector.extract_strided_slice %26 {offsets = [0, 28, 0], sizes = [2, 2, 128], strides = [1, 1, 1]} : vector<2x64x128xf32> to vector<2x2x128xf32>
    %cst_30 = arith.constant dense<0xFF800000> : vector<2x128xf32>
    %70 = vector.multi_reduction <maximumf>, %69, %cst_30 [1] : vector<2x2x128xf32> to vector<2x128xf32>
    %71 = vector.shape_cast %70 : vector<2x128xf32> to vector<2x1x128xf32>
    %72 = vector.extract_strided_slice %26 {offsets = [0, 30, 0], sizes = [2, 2, 128], strides = [1, 1, 1]} : vector<2x64x128xf32> to vector<2x2x128xf32>
    %cst_31 = arith.constant dense<0xFF800000> : vector<2x128xf32>
    %73 = vector.multi_reduction <maximumf>, %72, %cst_31 [1] : vector<2x2x128xf32> to vector<2x128xf32>
    %74 = vector.shape_cast %73 : vector<2x128xf32> to vector<2x1x128xf32>
    %75 = vector.extract_strided_slice %26 {offsets = [0, 32, 0], sizes = [2, 2, 128], strides = [1, 1, 1]} : vector<2x64x128xf32> to vector<2x2x128xf32>
    %cst_32 = arith.constant dense<0xFF800000> : vector<2x128xf32>
    %76 = vector.multi_reduction <maximumf>, %75, %cst_32 [1] : vector<2x2x128xf32> to vector<2x128xf32>
    %77 = vector.shape_cast %76 : vector<2x128xf32> to vector<2x1x128xf32>
    %78 = vector.extract_strided_slice %26 {offsets = [0, 34, 0], sizes = [2, 2, 128], strides = [1, 1, 1]} : vector<2x64x128xf32> to vector<2x2x128xf32>
    %cst_33 = arith.constant dense<0xFF800000> : vector<2x128xf32>
    %79 = vector.multi_reduction <maximumf>, %78, %cst_33 [1] : vector<2x2x128xf32> to vector<2x128xf32>
    %80 = vector.shape_cast %79 : vector<2x128xf32> to vector<2x1x128xf32>
    %81 = vector.extract_strided_slice %26 {offsets = [0, 36, 0], sizes = [2, 2, 128], strides = [1, 1, 1]} : vector<2x64x128xf32> to vector<2x2x128xf32>
    %cst_34 = arith.constant dense<0xFF800000> : vector<2x128xf32>
    %82 = vector.multi_reduction <maximumf>, %81, %cst_34 [1] : vector<2x2x128xf32> to vector<2x128xf32>
    %83 = vector.shape_cast %82 : vector<2x128xf32> to vector<2x1x128xf32>
    %84 = vector.extract_strided_slice %26 {offsets = [0, 38, 0], sizes = [2, 2, 128], strides = [1, 1, 1]} : vector<2x64x128xf32> to vector<2x2x128xf32>
    %cst_35 = arith.constant dense<0xFF800000> : vector<2x128xf32>
    %85 = vector.multi_reduction <maximumf>, %84, %cst_35 [1] : vector<2x2x128xf32> to vector<2x128xf32>
    %86 = vector.shape_cast %85 : vector<2x128xf32> to vector<2x1x128xf32>
    %87 = vector.extract_strided_slice %26 {offsets = [0, 40, 0], sizes = [2, 2, 128], strides = [1, 1, 1]} : vector<2x64x128xf32> to vector<2x2x128xf32>
    %cst_36 = arith.constant dense<0xFF800000> : vector<2x128xf32>
    %88 = vector.multi_reduction <maximumf>, %87, %cst_36 [1] : vector<2x2x128xf32> to vector<2x128xf32>
    %89 = vector.shape_cast %88 : vector<2x128xf32> to vector<2x1x128xf32>
    %90 = vector.extract_strided_slice %26 {offsets = [0, 42, 0], sizes = [2, 2, 128], strides = [1, 1, 1]} : vector<2x64x128xf32> to vector<2x2x128xf32>
    %cst_37 = arith.constant dense<0xFF800000> : vector<2x128xf32>
    %91 = vector.multi_reduction <maximumf>, %90, %cst_37 [1] : vector<2x2x128xf32> to vector<2x128xf32>
    %92 = vector.shape_cast %91 : vector<2x128xf32> to vector<2x1x128xf32>
    %93 = vector.extract_strided_slice %26 {offsets = [0, 44, 0], sizes = [2, 2, 128], strides = [1, 1, 1]} : vector<2x64x128xf32> to vector<2x2x128xf32>
    %cst_38 = arith.constant dense<0xFF800000> : vector<2x128xf32>
    %94 = vector.multi_reduction <maximumf>, %93, %cst_38 [1] : vector<2x2x128xf32> to vector<2x128xf32>
    %95 = vector.shape_cast %94 : vector<2x128xf32> to vector<2x1x128xf32>
    %96 = vector.extract_strided_slice %26 {offsets = [0, 46, 0], sizes = [2, 2, 128], strides = [1, 1, 1]} : vector<2x64x128xf32> to vector<2x2x128xf32>
    %cst_39 = arith.constant dense<0xFF800000> : vector<2x128xf32>
    %97 = vector.multi_reduction <maximumf>, %96, %cst_39 [1] : vector<2x2x128xf32> to vector<2x128xf32>
    %98 = vector.shape_cast %97 : vector<2x128xf32> to vector<2x1x128xf32>
    %99 = vector.extract_strided_slice %26 {offsets = [0, 48, 0], sizes = [2, 2, 128], strides = [1, 1, 1]} : vector<2x64x128xf32> to vector<2x2x128xf32>
    %cst_40 = arith.constant dense<0xFF800000> : vector<2x128xf32>
    %100 = vector.multi_reduction <maximumf>, %99, %cst_40 [1] : vector<2x2x128xf32> to vector<2x128xf32>
    %101 = vector.shape_cast %100 : vector<2x128xf32> to vector<2x1x128xf32>
    %102 = vector.extract_strided_slice %26 {offsets = [0, 50, 0], sizes = [2, 2, 128], strides = [1, 1, 1]} : vector<2x64x128xf32> to vector<2x2x128xf32>
    %cst_41 = arith.constant dense<0xFF800000> : vector<2x128xf32>
    %103 = vector.multi_reduction <maximumf>, %102, %cst_41 [1] : vector<2x2x128xf32> to vector<2x128xf32>
    %104 = vector.shape_cast %103 : vector<2x128xf32> to vector<2x1x128xf32>
    %105 = vector.extract_strided_slice %26 {offsets = [0, 52, 0], sizes = [2, 2, 128], strides = [1, 1, 1]} : vector<2x64x128xf32> to vector<2x2x128xf32>
    %cst_42 = arith.constant dense<0xFF800000> : vector<2x128xf32>
    %106 = vector.multi_reduction <maximumf>, %105, %cst_42 [1] : vector<2x2x128xf32> to vector<2x128xf32>
    %107 = vector.shape_cast %106 : vector<2x128xf32> to vector<2x1x128xf32>
    %108 = vector.extract_strided_slice %26 {offsets = [0, 54, 0], sizes = [2, 2, 128], strides = [1, 1, 1]} : vector<2x64x128xf32> to vector<2x2x128xf32>
    %cst_43 = arith.constant dense<0xFF800000> : vector<2x128xf32>
    %109 = vector.multi_reduction <maximumf>, %108, %cst_43 [1] : vector<2x2x128xf32> to vector<2x128xf32>
    %110 = vector.shape_cast %109 : vector<2x128xf32> to vector<2x1x128xf32>
    %111 = vector.extract_strided_slice %26 {offsets = [0, 56, 0], sizes = [2, 2, 128], strides = [1, 1, 1]} : vector<2x64x128xf32> to vector<2x2x128xf32>
    %cst_44 = arith.constant dense<0xFF800000> : vector<2x128xf32>
    %112 = vector.multi_reduction <maximumf>, %111, %cst_44 [1] : vector<2x2x128xf32> to vector<2x128xf32>
    %113 = vector.shape_cast %112 : vector<2x128xf32> to vector<2x1x128xf32>
    %114 = vector.extract_strided_slice %26 {offsets = [0, 58, 0], sizes = [2, 2, 128], strides = [1, 1, 1]} : vector<2x64x128xf32> to vector<2x2x128xf32>
    %cst_45 = arith.constant dense<0xFF800000> : vector<2x128xf32>
    %115 = vector.multi_reduction <maximumf>, %114, %cst_45 [1] : vector<2x2x128xf32> to vector<2x128xf32>
    %116 = vector.shape_cast %115 : vector<2x128xf32> to vector<2x1x128xf32>
    %117 = vector.extract_strided_slice %26 {offsets = [0, 60, 0], sizes = [2, 2, 128], strides = [1, 1, 1]} : vector<2x64x128xf32> to vector<2x2x128xf32>
    %cst_46 = arith.constant dense<0xFF800000> : vector<2x128xf32>
    %118 = vector.multi_reduction <maximumf>, %117, %cst_46 [1] : vector<2x2x128xf32> to vector<2x128xf32>
    %119 = vector.shape_cast %118 : vector<2x128xf32> to vector<2x1x128xf32>
    %120 = vector.extract_strided_slice %26 {offsets = [0, 62, 0], sizes = [2, 2, 128], strides = [1, 1, 1]} : vector<2x64x128xf32> to vector<2x2x128xf32>
    %cst_47 = arith.constant dense<0xFF800000> : vector<2x128xf32>
    %121 = vector.multi_reduction <maximumf>, %120, %cst_47 [1] : vector<2x2x128xf32> to vector<2x128xf32>
    %122 = vector.shape_cast %121 : vector<2x128xf32> to vector<2x1x128xf32>
    %cst_48 = arith.constant 0.000000e+00 : f32
    %123 = vector.broadcast %cst_48 : f32 to vector<2x2x128xf32>
    %cst_49 = arith.constant 0.000000e+00 : f32
    %124 = vector.broadcast %cst_49 : f32 to vector<2x2x128xf32>
    %125 = tpu.concatenate %123, %29, %32, %35, %38, %41, %44, %47, %50, %53, %56, %59, %62, %65, %68, %71 in 1 : vector<2x2x128xf32>, vector<2x1x128xf32>, vector<2x1x128xf32>, vector<2x1x128xf32>, vector<2x1x128xf32>, vector<2x1x128xf32>, vector<2x1x128xf32>, vector<2x1x128xf32>, vector<2x1x128xf32>, vector<2x1x128xf32>, vector<2x1x128xf32>, vector<2x1x128xf32>, vector<2x1x128xf32>, vector<2x1x128xf32>, vector<2x1x128xf32>, vector<2x1x128xf32> -> vector<2x17x128xf32>
    %126 = tpu.concatenate %74, %77, %80, %83, %86, %89, %92, %95, %98, %101, %104, %107, %110, %113, %116, %119 in 1 : vector<2x1x128xf32>, vector<2x1x128xf32>, vector<2x1x128xf32>, vector<2x1x128xf32>, vector<2x1x128xf32>, vector<2x1x128xf32>, vector<2x1x128xf32>, vector<2x1x128xf32>, vector<2x1x128xf32>, vector<2x1x128xf32>, vector<2x1x128xf32>, vector<2x1x128xf32>, vector<2x1x128xf32>, vector<2x1x128xf32>, vector<2x1x128xf32>, vector<2x1x128xf32> -> vector<2x16x128xf32>
    %127 = tpu.concatenate %122, %124 in 1 : vector<2x1x128xf32>, vector<2x2x128xf32> -> vector<2x3x128xf32>
    %128 = tpu.concatenate %125, %126, %127 in 1 : vector<2x17x128xf32>, vector<2x16x128xf32>, vector<2x3x128xf32> -> vector<2x36x128xf32>
    %129 = arith.truncf %128 : vector<2x36x128xf32> to vector<2x36x128xbf16>
    %130 = vector.extract_strided_slice %129 {offsets = [0, 0, 0], sizes = [2, 32, 128], strides = [1, 1, 1]} : vector<2x36x128xbf16> to vector<2x32x128xbf16>
    %131 = vector.shape_cast %130 : vector<2x32x128xbf16> to vector<64x128xbf16>
    %c0_50 = arith.constant 0 : index
    %c0_51 = arith.constant 0 : index
    %c0_52 = arith.constant 0 : index
    %132 = vector.load %arg5[%c0_50, %c0_51, %c0_52] : memref<5x128x128xbf16, #tpu.memory_space<vmem>>, vector<1x128x128xbf16>
    %133 = vector.shape_cast %132 : vector<1x128x128xbf16> to vector<128x128xbf16>
    %cst_53 = arith.constant dense<0.000000e+00> : vector<64x128xf32>
    %134 = tpu.matmul %131, %133, %cst_53 {dimension_numbers = #tpu.dot_dimension_numbers<[1], [0], [0], [1], [0, 0, 1, 1], [], []>} : vector<64x128xbf16>, vector<128x128xbf16>, vector<64x128xf32> -> vector<64x128xf32>
    %135 = vector.extract_strided_slice %129 {offsets = [0, 1, 0], sizes = [2, 32, 128], strides = [1, 1, 1]} : vector<2x36x128xbf16> to vector<2x32x128xbf16>
    %136 = vector.shape_cast %135 : vector<2x32x128xbf16> to vector<64x128xbf16>
    %c1_54 = arith.constant 1 : index
    %c0_55 = arith.constant 0 : index
    %c0_56 = arith.constant 0 : index
    %137 = vector.load %arg5[%c1_54, %c0_55, %c0_56] : memref<5x128x128xbf16, #tpu.memory_space<vmem>>, vector<1x128x128xbf16>
    %138 = vector.shape_cast %137 : vector<1x128x128xbf16> to vector<128x128xbf16>
    %cst_57 = arith.constant dense<0.000000e+00> : vector<64x128xf32>
    %139 = tpu.matmul %136, %138, %cst_57 {dimension_numbers = #tpu.dot_dimension_numbers<[1], [0], [0], [1], [0, 0, 1, 1], [], []>} : vector<64x128xbf16>, vector<128x128xbf16>, vector<64x128xf32> -> vector<64x128xf32>
    %140 = arith.addf %134, %139 : vector<64x128xf32>
    %141 = vector.extract_strided_slice %129 {offsets = [0, 2, 0], sizes = [2, 32, 128], strides = [1, 1, 1]} : vector<2x36x128xbf16> to vector<2x32x128xbf16>
    %142 = vector.shape_cast %141 : vector<2x32x128xbf16> to vector<64x128xbf16>
    %c2_58 = arith.constant 2 : index
    %c0_59 = arith.constant 0 : index
    %c0_60 = arith.constant 0 : index
    %143 = vector.load %arg5[%c2_58, %c0_59, %c0_60] : memref<5x128x128xbf16, #tpu.memory_space<vmem>>, vector<1x128x128xbf16>
    %144 = vector.shape_cast %143 : vector<1x128x128xbf16> to vector<128x128xbf16>
    %cst_61 = arith.constant dense<0.000000e+00> : vector<64x128xf32>
    %145 = tpu.matmul %142, %144, %cst_61 {dimension_numbers = #tpu.dot_dimension_numbers<[1], [0], [0], [1], [0, 0, 1, 1], [], []>} : vector<64x128xbf16>, vector<128x128xbf16>, vector<64x128xf32> -> vector<64x128xf32>
    %146 = arith.addf %140, %145 : vector<64x128xf32>
    %147 = vector.extract_strided_slice %129 {offsets = [0, 3, 0], sizes = [2, 32, 128], strides = [1, 1, 1]} : vector<2x36x128xbf16> to vector<2x32x128xbf16>
    %148 = vector.shape_cast %147 : vector<2x32x128xbf16> to vector<64x128xbf16>
    %c3 = arith.constant 3 : index
    %c0_62 = arith.constant 0 : index
    %c0_63 = arith.constant 0 : index
    %149 = vector.load %arg5[%c3, %c0_62, %c0_63] : memref<5x128x128xbf16, #tpu.memory_space<vmem>>, vector<1x128x128xbf16>
    %150 = vector.shape_cast %149 : vector<1x128x128xbf16> to vector<128x128xbf16>
    %cst_64 = arith.constant dense<0.000000e+00> : vector<64x128xf32>
    %151 = tpu.matmul %148, %150, %cst_64 {dimension_numbers = #tpu.dot_dimension_numbers<[1], [0], [0], [1], [0, 0, 1, 1], [], []>} : vector<64x128xbf16>, vector<128x128xbf16>, vector<64x128xf32> -> vector<64x128xf32>
    %152 = arith.addf %146, %151 : vector<64x128xf32>
    %153 = vector.extract_strided_slice %129 {offsets = [0, 4, 0], sizes = [2, 32, 128], strides = [1, 1, 1]} : vector<2x36x128xbf16> to vector<2x32x128xbf16>
    %154 = vector.shape_cast %153 : vector<2x32x128xbf16> to vector<64x128xbf16>
    %c4 = arith.constant 4 : index
    %c0_65 = arith.constant 0 : index
    %c0_66 = arith.constant 0 : index
    %155 = vector.load %arg5[%c4, %c0_65, %c0_66] : memref<5x128x128xbf16, #tpu.memory_space<vmem>>, vector<1x128x128xbf16>
    %156 = vector.shape_cast %155 : vector<1x128x128xbf16> to vector<128x128xbf16>
    %cst_67 = arith.constant dense<0.000000e+00> : vector<64x128xf32>
    %157 = tpu.matmul %154, %156, %cst_67 {dimension_numbers = #tpu.dot_dimension_numbers<[1], [0], [0], [1], [0, 0, 1, 1], [], []>} : vector<64x128xbf16>, vector<128x128xbf16>, vector<64x128xf32> -> vector<64x128xf32>
    %158 = arith.addf %152, %157 : vector<64x128xf32>
    %c0_68 = arith.constant 0 : index
    %c0_69 = arith.constant 0 : index
    %159 = vector.load %arg6[%c0_68, %c0_69] : memref<1x128xf32, #tpu.memory_space<vmem>>, vector<1x128xf32>
    %160 = vector.broadcast %159 : vector<1x128xf32> to vector<64x128xf32>
    %161 = arith.mulf %158, %160 : vector<64x128xf32>
    %c0_70 = arith.constant 0 : index
    %c0_71 = arith.constant 0 : index
    %162 = vector.load %arg7[%c0_70, %c0_71] : memref<1x128xf32, #tpu.memory_space<vmem>>, vector<1x128xf32>
    %163 = vector.broadcast %162 : vector<1x128xf32> to vector<64x128xf32>
    %164 = arith.addf %161, %163 : vector<64x128xf32>
    %165 = vector.shape_cast %164 : vector<64x128xf32> to vector<2x32x128xf32>
    %166 = vector.extract_strided_slice %165 {offsets = [0, 0, 0], sizes = [2, 4, 128], strides = [1, 1, 1]} : vector<2x32x128xf32> to vector<2x4x128xf32>
    %cst_72 = arith.constant dense<0xFF800000> : vector<2x128xf32>
    %167 = vector.multi_reduction <maximumf>, %166, %cst_72 [1] : vector<2x4x128xf32> to vector<2x128xf32>
    %168 = vector.shape_cast %167 : vector<2x128xf32> to vector<2x1x128xf32>
    %169 = vector.extract_strided_slice %165 {offsets = [0, 4, 0], sizes = [2, 4, 128], strides = [1, 1, 1]} : vector<2x32x128xf32> to vector<2x4x128xf32>
    %cst_73 = arith.constant dense<0xFF800000> : vector<2x128xf32>
    %170 = vector.multi_reduction <maximumf>, %169, %cst_73 [1] : vector<2x4x128xf32> to vector<2x128xf32>
    %171 = vector.shape_cast %170 : vector<2x128xf32> to vector<2x1x128xf32>
    %172 = vector.extract_strided_slice %165 {offsets = [0, 8, 0], sizes = [2, 4, 128], strides = [1, 1, 1]} : vector<2x32x128xf32> to vector<2x4x128xf32>
    %cst_74 = arith.constant dense<0xFF800000> : vector<2x128xf32>
    %173 = vector.multi_reduction <maximumf>, %172, %cst_74 [1] : vector<2x4x128xf32> to vector<2x128xf32>
    %174 = vector.shape_cast %173 : vector<2x128xf32> to vector<2x1x128xf32>
    %175 = vector.extract_strided_slice %165 {offsets = [0, 12, 0], sizes = [2, 4, 128], strides = [1, 1, 1]} : vector<2x32x128xf32> to vector<2x4x128xf32>
    %cst_75 = arith.constant dense<0xFF800000> : vector<2x128xf32>
    %176 = vector.multi_reduction <maximumf>, %175, %cst_75 [1] : vector<2x4x128xf32> to vector<2x128xf32>
    %177 = vector.shape_cast %176 : vector<2x128xf32> to vector<2x1x128xf32>
    %178 = vector.extract_strided_slice %165 {offsets = [0, 16, 0], sizes = [2, 4, 128], strides = [1, 1, 1]} : vector<2x32x128xf32> to vector<2x4x128xf32>
    %cst_76 = arith.constant dense<0xFF800000> : vector<2x128xf32>
    %179 = vector.multi_reduction <maximumf>, %178, %cst_76 [1] : vector<2x4x128xf32> to vector<2x128xf32>
    %180 = vector.shape_cast %179 : vector<2x128xf32> to vector<2x1x128xf32>
    %181 = vector.extract_strided_slice %165 {offsets = [0, 20, 0], sizes = [2, 4, 128], strides = [1, 1, 1]} : vector<2x32x128xf32> to vector<2x4x128xf32>
    %cst_77 = arith.constant dense<0xFF800000> : vector<2x128xf32>
    %182 = vector.multi_reduction <maximumf>, %181, %cst_77 [1] : vector<2x4x128xf32> to vector<2x128xf32>
    %183 = vector.shape_cast %182 : vector<2x128xf32> to vector<2x1x128xf32>
    %184 = vector.extract_strided_slice %165 {offsets = [0, 24, 0], sizes = [2, 4, 128], strides = [1, 1, 1]} : vector<2x32x128xf32> to vector<2x4x128xf32>
    %cst_78 = arith.constant dense<0xFF800000> : vector<2x128xf32>
    %185 = vector.multi_reduction <maximumf>, %184, %cst_78 [1] : vector<2x4x128xf32> to vector<2x128xf32>
    %186 = vector.shape_cast %185 : vector<2x128xf32> to vector<2x1x128xf32>
    %187 = vector.extract_strided_slice %165 {offsets = [0, 28, 0], sizes = [2, 4, 128], strides = [1, 1, 1]} : vector<2x32x128xf32> to vector<2x4x128xf32>
    %cst_79 = arith.constant dense<0xFF800000> : vector<2x128xf32>
    %188 = vector.multi_reduction <maximumf>, %187, %cst_79 [1] : vector<2x4x128xf32> to vector<2x128xf32>
    %189 = vector.shape_cast %188 : vector<2x128xf32> to vector<2x1x128xf32>
    %190 = tpu.concatenate %168, %171, %174, %177, %180, %183, %186, %189 in 1 : vector<2x1x128xf32>, vector<2x1x128xf32>, vector<2x1x128xf32>, vector<2x1x128xf32>, vector<2x1x128xf32>, vector<2x1x128xf32>, vector<2x1x128xf32>, vector<2x1x128xf32> -> vector<2x8x128xf32>
    %c0_80 = arith.constant 0 : index
    %c0_81 = arith.constant 0 : index
    %c0_82 = arith.constant 0 : index
    %191 = vector.load %arg8[%c0_80, %c0_81, %c0_82] : memref<2x8x128xf32, #tpu.memory_space<vmem>>, vector<2x8x128xf32>
    tpu.vector_store %arg8[%c0_80, %c0_81, %c0_82], %190 {strides = array<i32>} : memref<2x8x128xf32, #tpu.memory_space<vmem>>, vector<2x8x128xf32>,
    return
  }
  func.func @transform_0(%arg0: i32) -> (i32, i32, i32) {
    %c0_i32 = arith.constant 0 : i32
    %c0_i32_0 = arith.constant 0 : i32
    %c0_i32_1 = arith.constant 0 : i32
    return %arg0, %c0_i32, %c0_i32_0 : i32, i32, i32
  }
  func.func @transform_1(%arg0: i32) -> (i32, i32, i32) {
    %c0_i32 = arith.constant 0 : i32
    %c0_i32_0 = arith.constant 0 : i32
    %c0_i32_1 = arith.constant 0 : i32
    %c0_i32_2 = arith.constant 0 : i32
    return %c0_i32, %c0_i32_0, %c0_i32_1 : i32, i32, i32
  }
  func.func @transform_2(%arg0: i32) -> (i32, i32) {
    %c0_i32 = arith.constant 0 : i32
    %c0_i32_0 = arith.constant 0 : i32
    %c0_i32_1 = arith.constant 0 : i32
    return %c0_i32, %c0_i32_0 : i32, i32
  }
  func.func @transform_3(%arg0: i32) -> (i32, i32) {
    %c0_i32 = arith.constant 0 : i32
    %c0_i32_0 = arith.constant 0 : i32
    %c0_i32_1 = arith.constant 0 : i32
    return %c0_i32, %c0_i32_0 : i32, i32
  }
  func.func @transform_4(%arg0: i32) -> (i32, i32, i32) {
    %c0_i32 = arith.constant 0 : i32
    %c0_i32_0 = arith.constant 0 : i32
    %c0_i32_1 = arith.constant 0 : i32
    %c0_i32_2 = arith.constant 0 : i32
    return %c0_i32, %c0_i32_0, %c0_i32_1 : i32, i32, i32
  }
  func.func @transform_5(%arg0: i32) -> (i32, i32) {
    %c0_i32 = arith.constant 0 : i32
    %c0_i32_0 = arith.constant 0 : i32
    %c0_i32_1 = arith.constant 0 : i32
    return %c0_i32, %c0_i32_0 : i32, i32
  }
  func.func @transform_6(%arg0: i32) -> (i32, i32) {
    %c0_i32 = arith.constant 0 : i32
    %c0_i32_0 = arith.constant 0 : i32
    %c0_i32_1 = arith.constant 0 : i32
    return %c0_i32, %c0_i32_0 : i32, i32
  }
  func.func @transform_7(%arg0: i32) -> (i32, i32, i32) {
    %c0_i32 = arith.constant 0 : i32
    %c0_i32_0 = arith.constant 0 : i32
    %c0_i32_1 = arith.constant 0 : i32
    return %arg0, %c0_i32, %c0_i32_0 : i32, i32, i32
  }
}

</mosaic_0001>

<bundles_post_ra>
// kernel: _lambda_.1
= control target key start
LH: loop header
LB: loop body
LE: loop exit
PB: predicated region body
PF: predicated region fallthrough
CT: control target
= control target key end

     0   :  { %12 = vsyncpa [#allocation3], 0  ;;  %s2759_s24 = smov [#allocation2]   ;;  %s3638_s0 = inlined_call_operand.vmem [shape: bf16[2,66,4], index: 0, kind: input, shape index: {}]   ;;  %s3639_s1 = inlined_call_operand.vmem [shape: bf16[3,4,128], index: 1, kind: input, shape index: {}]   ;;  %s3640_s2 = inlined_call_operand.vmem [shape: f32[1,128], index: 2, kind: input, shape index: {}]   ;;  %s3641_s3 = inlined_call_operand.vmem [shape: f32[1,128], index: 3, kind: input, shape index: {}]   ;;  %s3642_s4 = inlined_call_operand.hbm [shape: bf16[5,128,128], index: 4, kind: input, shape index: {}]   ;;  %s3643_s5 = inlined_call_operand.vmem [shape: f32[1,128], index: 5, kind: input, shape index: {}]   ;;  %s3644_s6 = inlined_call_operand.vmem [shape: f32[1,128], index: 6, kind: input, shape index: {}]   ;;  %s3645_s7 = inlined_call_operand.vmem [shape: f32[2,8,128], index: 7, kind: output, shape index: {}]  }
   0x1   :  { %s26_s25 = sshll.u32 %s2759_s24, 4  ;;  %s27_s25 = int_to_ptr.vmem [resolvable:$true] %s26_s25 }
   0x2   :  { %s2745_s26 = scalar_lea.vmem %s27_s25, 5120  ;;  %p2750_p1 = scmp.lt.s32.totalorder %s27_s25, %s27_s25 }
   0x3   :  { %p2746_p0 = scmp.ne.s32.totalorder %s27_s25, %s2745_s26  ;;  %p2751_p2 = scmp.lt.s32.totalorder %s2745_s26, %s2745_s26 }
   0x5   :  { %p2752_p3 = por %p2751_p2, %p2750_p1 }
   0x7   :  { %p2753_p4 = pnand %p2752_p3, %p2746_p0 }
   0x9   :  { %2756 = shalt.err (!%p2753_p4)
}
   0xa   :  { %s2760_s27 = smov 64   ;;  %s2761_s28 = smov 4  }
   0xb   :  { %32 = dma.hbm_to_vmem [thread:$0]  %s3642_s4, 5120, %s27_s25, [#allocation3], %s2760_s27, %s2760_s27, %s2761_s28  }
   0xc   :  { %2757 = dma.done.wait [#allocation3], 5120  }
   0xd   :  { %2758 = vsyncadd [#allocation3], 4294962176  ;;  %vm282_vm0 = vcmask 1041408   ;;  %vm60_vm1 = vsmask.f32 3328  ;;  %vm257_vm3 = vcmask 31744  }
   0xe   :  { %vm61_vm2 = vsmask.f32 7440  ;;  %v2324_v0 = vld [vmem:[%s3639_s1 + $0x2] sm:$0x3]  ;;  %v59_v1 = vld [vmem:[%s3639_s1] sm:$0x3] }
   0xf   :  { %v2814_v2 = vld [vmem:[%s3638_s0] sm:$0xf]  ;;  %2681 = vmatprep.subr.msk.bf16.mxu0 %vm282_vm0, %v2324_v0  ;;  %v284_v3 = vsel %vm282_vm0, %v2324_v0, 0  ;;  %2682 = vmatprep.subr.msk.bf16.mxu1 %vm282_vm0, %v59_v1  ;;  %v448_v4 = vsel %vm282_vm0, %v59_v1, 0  ;;  %v2823_v5 = vld [vmem:[%s3638_s0 + $0x4] sm:$0xf]  ;;  %vm2858_vm4 = vmor %vm60_vm1, %vm61_vm2 }
  0x10   :  { %v2828_v6 = vld [vmem:[%s3638_s0 + $0x8] sm:$0xf]  ;;  %2508 = vmatpush3.bf16.msra.mxu0 %v284_v3  ;;  %2526 = vmatpush3.bf16.msra.mxu1 %v448_v4  ;;  %v64_v7 = vshrl.u32 %v2814_v2, 16  ;;  %v67_v8 = vshll.u32 %v2814_v2, 16  ;;  %v73_v9 = vshll.u32 %v2823_v5, 16  ;;  %v77_v10 = vshrl.u32 %v2823_v5, 16 }
  0x11   :  { %v2359_v11 = vld [vmem:[%s3639_s1 + $0x4] sm:$0x3]  ;;  %v83_v12 = vshll.u32 %v2828_v6, 16  ;;  %v87_v13 = vshrl.u32 %v2828_v6, 16  ;;  %v2341_v14 = vcombine.low %v2814_v2, %v2823_v5  ;;  %v2845_v15 = vld [vmem:[%s3638_s0 + $0xc] sm:$0xf] }
  0x12   :  { %2683 = vmatprep.subr.msk.bf16.mxu0 %vm282_vm0, %v2359_v11  ;;  %v2850_v16 = vld [vmem:[%s3638_s0 + $0x10] sm:$0xf]  ;;  %v66_v17 = vrot.slane %v64_v7, 4  ;;  %v69_v18 = vrot.slane %v67_v8, 5  ;;  %v75_v19 = vrot.slane %v73_v9, 5  ;;  %v79_v20 = vrot.slane %v77_v10, 4 }
  0x13   :  { %v85_v21 = vrot.slane %v83_v12, 5  ;;  %v89_v22 = vrot.slane %v87_v13, 4  ;;  %2527 = vmatprep.mubr.msk.bf16.mxu1 %vm257_vm3, %v2341_v14  ;;  %v93_v23 = vshll.u32 %v2845_v15, 16  ;;  %v97_v24 = vshrl.u32 %v2845_v15, 16  ;;  %v2865_v32 = vld [vmem:[%s3638_s0 + $0x14] sm:$0xf] }
  0x14   :  { %v70_v25 = vor.u32 %v69_v18, %v66_v17  ;;  %v80_v26 = vor.u32 %v79_v20, %v75_v19  ;;  %v103_v27 = vshll.u32 %v2850_v16, 16  ;;  %v2342_v36 = vcombine.low %v2828_v6, %v2845_v15  ;;  %v2873_v40 = vld [vmem:[%s3638_s0 + $0x18] sm:$0xf]  ;;  %v2886_v46 = vld [vmem:[%s3638_s0 + $0x1c] sm:$0xf] }
  0x15   :  { %v90_v29 = vor.u32 %v89_v22, %v85_v21  ;;  %v95_v30 = vrot.slane %v93_v23, 5  ;;  %v99_v31 = vrot.slane %v97_v24, 4  ;;  %v653_v39 = vsel %vm282_vm0, %v2359_v11, 0  ;;  %v2893_v51 = vld [vmem:[%s3638_s0 + $0x20] sm:$0x1] }
  0x16   :  { %v71_v33 = vrot.slane %v70_v25, 4  ;;  %v81_v34 = vrot.slane %v80_v26, 4  ;;  %v105_v35 = vrot.slane %v103_v27, 5  ;;  %v107_v41 = vshrl.u32 %v2850_v16, 16  ;;  %2528 = vmatmul.mubr.msk.bf16.vlgmr.msra.gmra.mxu1 %vm257_vm3, %v2342_v36  ;;  %v2901_v56 = vld [vmem:[%s3638_s0 + $0x24] sm:$0xf] }
  0x17   :  { %v91_v37 = vrot.slane %v90_v29, 4  ;;  %v100_v38 = vor.u32 %v99_v31, %v95_v30  ;;  %v113_v44 = vshll.u32 %v2865_v32, 16  ;;  %v117_v45 = vshrl.u32 %v2865_v32, 16  ;;  %v2911_v61 = vld [vmem:[%s3638_s0 + $0x28] sm:$0xf] }
  0x18   :  { %v76_v42 = vsel %vm2858_vm4, %v71_v33, %v75_v19  ;;  %v86_v43 = vsel %vm2858_vm4, %v81_v34, %v85_v21  ;;  %v109_v50 = vrot.slane %v107_v41, 4  ;;  %v123_v54 = vshll.u32 %v2873_v40, 16  ;;  %v2919_v9 = vld [vmem:[%s3638_s0 + $0x2c] sm:$0xf]  ;;  %v2931_v20 = vld [vmem:[%s3638_s0 + $0x30] sm:$0xf] }
  0x19   :  { %v2325_v47 = vcombine.low %v76_v42, %v86_v43  ;;  %v96_v48 = vsel %vm2858_vm4, %v91_v37, %v95_v30  ;;  %v101_v49 = vrot.slane %v100_v38, 4  ;;  %v115_v52 = vrot.slane %v113_v44, 5  ;;  %v2941_v30 = vld [vmem:[%s3638_s0 + $0x34] sm:$0xf]  ;;  %v2953_v41 = vld [vmem:[%s3638_s0 + $0x38] sm:$0xf] }
  0x1a   :  { %v119_v53 = vrot.slane %v117_v45, 4  ;;  %v2343_v55 = vcombine.low %v2850_v16, %v2865_v32  ;;  %v110_v58 = vor.u32 %v109_v50, %v105_v35  ;;  %v127_v59 = vshrl.u32 %v2873_v40, 16 }
  0x1b   :  { %2509 = vmatprep.mubr.msk.bf16.mxu0 %vm257_vm3, %v2325_v47  ;;  %v106_v57 = vsel %vm2858_vm4, %v101_v49, %v105_v35  ;;  %v133_v60 = vshll.u32 %v2886_v46, 16  ;;  %v125_v0 = vrot.slane %v123_v54, 5  ;;  %v137_v1 = vshrl.u32 %v2886_v46, 16  ;;  %v2963_v47 = vld [vmem:[%s3638_s0 + $0x3c] sm:$0xf] }
  0x1c   :  { %v2326_v62 = vcombine.low %v96_v48, %v106_v57  ;;  %v120_v63 = vor.u32 %v119_v53, %v115_v52  ;;  %2531 = vmatprep.mubr.msk.bf16.mxu1 %vm257_vm3, %v2343_v55  ;;  %v111_v3 = vrot.slane %v110_v58, 4  ;;  %v129_v4 = vrot.slane %v127_v59, 4 }
  0x1d   :  { %v135_v7 = vrot.slane %v133_v60, 5  ;;  %v143_v8 = vshll.u32 %v2893_v51, 16  ;;  %v139_v11 = vrot.slane %v137_v1, 4  ;;  %v2344_v12 = vcombine.low %v2873_v40, %v2886_v46 }
  0x1e   :  { %2510 = vmatmul.mubr.msk.bf16.vlgmr.msra.gmra.mxu0 %vm257_vm3, %v2326_v62  ;;  %v121_v10 = vrot.slane %v120_v63, 4  ;;  %v148_v13 = vshrl.u32 %v2901_v56, 16  ;;  %v116_v14 = vsel %vm2858_vm4, %v111_v3, %v115_v52  ;;  %v130_v17 = vor.u32 %v129_v4, %v125_v0  ;;  %v2975_v63 = vld [vmem:[%s3638_s0 + $0x40] sm:$0xf] }
  0x1f   :  { %2544 = vmatpush3.bf16.msra.mxu0 %v653_v39  ;;  %v145_v18 = vrot.slane %v143_v8, 5  ;;  %v151_v19 = vshll.u32 %v2901_v56, 16  ;;  %v140_v22 = vor.u32 %v139_v11, %v135_v7  ;;  %2532 = vmatmul.mubr.msk.bf16.gmra.mxu1 %vm257_vm3, %v2344_v12  ;;  %v157_v24 = vshll.u32 %v2911_v61, 16 }
  0x20   :  { %v126_v21 = vsel %vm2858_vm4, %v121_v10, %v125_v0  ;;  %v150_v23 = vrot.slane %v148_v13, 4  ;;  %v131_v26 = vrot.slane %v130_v17, 4  ;;  %v161_v29 = vshrl.u32 %v2911_v61, 16 }
  0x21   :  { %v2327_v25 = vcombine.low %v116_v14, %v126_v21  ;;  %v153_v27 = vrot.slane %v151_v19, 5  ;;  %v141_v31 = vrot.slane %v140_v22, 4  ;;  %v159_v33 = vrot.slane %v157_v24, 5 }
  0x22   :  { %v167_v34 = vshll.u32 %v2919_v9, 16  ;;  %v2345_v35 = vcombine.low %v2901_v56, %v2911_v61  ;;  %v136_v36 = vsel %vm2858_vm4, %v131_v26, %v135_v7  ;;  %v163_v38 = vrot.slane %v161_v29, 4  ;;  %v2983_v7 = vld [vmem:[%s3638_s0 + $0x44] sm:$0x1] }
  0x23   :  { %2513 = vmatprep.mubr.msk.bf16.mxu0 %vm257_vm3, %v2327_v25  ;;  %v154_v37 = vor.u32 %v153_v27, %v150_v23  ;;  %v171_v39 = vshrl.u32 %v2919_v9, 16  ;;  %v146_v42 = vsel %vm2858_vm4, %v141_v31, %v145_v18  ;;  %v177_v44 = vshll.u32 %v2931_v20, 16 }
  0x24   :  { %v169_v43 = vrot.slane %v167_v34, 5  ;;  %2535 = vmatprep.mubr.msk.bf16.mxu1 %vm257_vm3, %v2345_v35  ;;  %v181_v45 = vshrl.u32 %v2931_v20, 16  ;;  %vm549_vm5 = vcmask 1042432   ;;  %vm550_vm6 = vcmask 1046532  }
  0x25   :  { %v2328_v48 = vcombine.low %v136_v36, %v146_v42  ;;  %v155_v49 = vrot.slane %v154_v37, 4  ;;  %v164_v50 = vor.u32 %v163_v38, %v159_v33  ;;  %v173_v52 = vrot.slane %v171_v39, 4  ;;  %vm3008_vm7 = vmor %vm549_vm5, %vm550_vm6 }
  0x26   :  { %v179_v53 = vrot.slane %v177_v44, 5  ;;  %v183_v54 = vrot.slane %v181_v45, 4  ;;  %v187_v55 = vshll.u32 %v2941_v30, 16  ;;  %v2346_v57 = vcombine.low %v2919_v9, %v2931_v20 }
  0x27   :  { %2514 = vmatmul.mubr.msk.bf16.gmra.mxu0 %vm257_vm3, %v2328_v48  ;;  %v160_v58 = vsel %vm2858_vm4, %v155_v49, %v159_v33  ;;  %v165_v59 = vrot.slane %v164_v50, 4  ;;  %v174_v60 = vor.u32 %v173_v52, %v169_v43  ;;  %v191_v62 = vshrl.u32 %v2941_v30, 16 }
  0x28   :  { %v184_v0 = vor.u32 %v183_v54, %v179_v53  ;;  %v189_v1 = vrot.slane %v187_v55, 5  ;;  %2536 = vmatmul.mubr.msk.bf16.gmra.mxu1 %vm257_vm3, %v2346_v57  ;;  %v197_v3 = vshll.u32 %v2953_v41, 16  ;;  %v201_v4 = vshrl.u32 %v2953_v41, 16 }
  0x29   :  { %v170_v8 = vsel %vm2858_vm4, %v165_v59, %v169_v43  ;;  %v175_v10 = vrot.slane %v174_v60, 4  ;;  %v193_v11 = vrot.slane %v191_v62, 4  ;;  %v207_v12 = vshll.u32 %v2963_v47, 16 }
  0x2a   :  { %v2329_v13 = vcombine.low %v160_v58, %v170_v8  ;;  %v185_v14 = vrot.slane %v184_v0, 4  ;;  %v199_v17 = vrot.slane %v197_v3, 5  ;;  %v203_v18 = vrot.slane %v201_v4, 4 }
  0x2b   :  { %v180_v19 = vsel %vm2858_vm4, %v175_v10, %v179_v53  ;;  %v194_v21 = vor.u32 %v193_v11, %v189_v1  ;;  %v209_v22 = vrot.slane %v207_v12, 5  ;;  %v2347_v23 = vcombine.low %v2941_v30, %v2953_v41 }
  0x2c   :  { %2517 = vmatprep.mubr.msk.bf16.mxu0 %vm257_vm3, %v2329_v13  ;;  %v190_v24 = vsel %vm2858_vm4, %v185_v14, %v189_v1  ;;  %v204_v25 = vor.u32 %v203_v18, %v199_v17  ;;  %v211_v26 = vshrl.u32 %v2963_v47, 16  ;;  %v217_v27 = vshll.u32 %v2975_v63, 16 }
  0x2d   :  { %v2330_v29 = vcombine.low %v180_v19, %v190_v24  ;;  %v195_v31 = vrot.slane %v194_v21, 4  ;;  %2539 = vmatprep.mubr.msk.bf16.mxu1 %vm257_vm3, %v2347_v23  ;;  %v221_v33 = vshrl.u32 %v2975_v63, 16  ;;  %v227_v34 = vshll.u32 %v2983_v7, 16 }
  0x2e   :  { %v205_v35 = vrot.slane %v204_v25, 4  ;;  %v213_v36 = vrot.slane %v211_v26, 4  ;;  %v219_v37 = vrot.slane %v217_v27, 5  ;;  %v2348_v38 = vcombine.low %v2963_v47, %v2975_v63 }
  0x2f   :  { %v560_v39 = vrot.slane %v2845_v15, 5  ;;  %2518 = vmatmul.mubr.msk.bf16.gmra.mxu0 %vm257_vm3, %v2330_v29  ;;  %v200_v42 = vsel %vm2858_vm4, %v195_v31, %v199_v17  ;;  %v223_v43 = vrot.slane %v221_v33, 4  ;;  %v2357_v45 = vrot.slane %v2814_v2, 9 }
  0x30   :  { %v210_v48 = vsel %vm2858_vm4, %v205_v35, %v209_v22  ;;  %v214_v49 = vor.u32 %v213_v36, %v209_v22  ;;  %2540 = vmatmul.mubr.msk.bf16.gmra.mxu1 %vm257_vm3, %v2348_v38  ;;  %v554_v15 = vrot.slane %v2823_v5, 5  ;;  %v557_v50 = vrot.slane %v2828_v6, 5 }
  0x31   :  { %v2331_v52 = vcombine.low %v200_v42, %v210_v48  ;;  %v224_v53 = vor.u32 %v223_v43, %v219_v37  ;;  %v229_v54 = vrot.slane %v227_v34, 5  ;;  %v563_v55 = vrot.slane %v2850_v16, 5 }
  0x32   :  { %v215_v57 = vrot.slane %v214_v49, 4  ;;  %v555_v58 = vsel %vm3008_vm7, %v2357_v45, %v554_v15  ;;  %v556_v2 = vrot.slane %v554_v15, 4  ;;  %v562_v60 = vrot.slane %v560_v39, 4  ;;  %v2695_v15 = vld [vmem:[#allocation2 + $0x38] sm:$0xff]  }
  0x33   :  { %2521 = vmatprep.mubr.msk.bf16.mxu0 %vm257_vm3, %v2331_v52  ;;  %v225_v59 = vrot.slane %v224_v53, 4  ;;  %v566_v62 = vrot.slane %v2865_v32, 5  ;;  %v559_v0 = vrot.slane %v557_v50, 4  ;;  %v565_v1 = vrot.slane %v563_v55, 4  ;;  %2585 = vmatprep.subr.bf16.mxu0 %v2695_v15  ;;  %v2698_v52 = vld [vmem:[#allocation2 + $0x28] sm:$0xff]  }
  0x34   :  { %v220_v5 = vsel %vm2858_vm4, %v215_v57, %v219_v37  ;;  %v558_v6 = vsel %vm3008_vm7, %v556_v2, %v557_v50  ;;  %v569_v10 = vrot.slane %v2873_v40, 5  ;;  %v572_v11 = vrot.slane %v2886_v46, 5  ;;  %v2696_v50 = vld [vmem:[#allocation2 + $0x30] sm:$0xff]  }
  0x35   :  { %v230_v16 = vsel %vm2858_vm4, %v225_v59, %v229_v54  ;;  %v2360_v3 = vcombine.low %v555_v58, %v558_v6  ;;  %v568_v8 = vrot.slane %v566_v62, 4  ;;  %v579_v32 = vrot.slane %v2911_v61, 5  ;;  %v2700_v6 = vld [vmem:[#allocation2 + $0x20] sm:$0xff]  }
  0x36   :  { %v2332_v4 = vcombine.low %v220_v5, %v230_v16  ;;  %v582_v12 = vrot.slane %v2919_v9, 5  ;;  %v561_v13 = vsel %vm3008_vm7, %v559_v0, %v560_v39  ;;  %v564_v28 = vsel %vm3008_vm7, %v562_v60, %v563_v55 }
  0x37   :  { %v585_v14 = vrot.slane %v2931_v20, 5  ;;  %v567_v40 = vsel %vm3008_vm7, %v565_v1, %v566_v62  ;;  %v570_v46 = vsel %vm3008_vm7, %v568_v8, %v569_v10  ;;  %v571_v17 = vrot.slane %v569_v10, 4  ;;  %v2699_v62 = vld [vmem:[#allocation2 + $0x70] sm:$0xff]  }
  0x38   :  { %2522 = vmatmul.mubr.msk.bf16.gmra.mxu0 %vm257_vm3, %v2332_v4  ;;  %v574_v61 = vrot.slane %v572_v11, 4  ;;  %v575_v9 = vrot.slane %v2893_v51, 5  ;;  %v2358_v18 = vrot.slane %v2901_v56, 9  ;;  %v588_v19 = vrot.slane %v2941_v30, 5 }
  0x39   :  { %2545 = vmatprep.mubr.msk.bf16.mxu0 %vm257_vm3, %v2360_v3  ;;  %v591_v21 = vrot.slane %v2953_v41, 5  ;;  %v2361_v22 = vcombine.low %v561_v13, %v564_v28  ;;  %v581_v23 = vrot.slane %v579_v32, 4  ;;  %v584_v24 = vrot.slane %v582_v12, 4 }
  0x3a   :  { %v2362_v20 = vcombine.low %v567_v40, %v570_v46  ;;  %v587_v25 = vrot.slane %v585_v14, 4  ;;  %v590_v26 = vrot.slane %v588_v19, 4  ;;  %v594_v29 = vrot.slane %v2963_v47, 5  ;;  %v2701_v40 = vld [vmem:[#allocation2 + $0x68] sm:$0xff]   ;;  %v2702_v46 = vld [vmem:[#allocation2 + $0x18] sm:$0xff]  }
  0x3b   :  { %v593_v27 = vrot.slane %v591_v21, 4  ;;  %v573_v51 = vsel %vm3008_vm7, %v571_v17, %v572_v11  ;;  %v576_v56 = vsel %vm3008_vm7, %v574_v61, %v575_v9  ;;  %v580_v30 = vsel %vm3008_vm7, %v2358_v18, %v579_v32  ;;  %v2703_v18 = vld [vmem:[#allocation2 + $0x60] sm:$0xff]  }
  0x3c   :  { %v583_v41 = vsel %vm3008_vm7, %v581_v23, %v582_v12  ;;  %v2363_v31 = vcombine.low %v573_v51, %v576_v56  ;;  %v586_v47 = vsel %vm3008_vm7, %v584_v24, %v585_v14  ;;  %v589_v34 = vsel %vm3008_vm7, %v587_v25, %v588_v19  ;;  %v2704_v19 = vld [vmem:[#allocation2 + $0x10] sm:$0xff]  }
  0x3d   :  { %v2364_v33 = vcombine.low %v580_v30, %v583_v41  ;;  %v597_v35 = vrot.slane %v2975_v63, 5  ;;  %v592_v36 = vsel %vm3008_vm7, %v590_v26, %v591_v21  ;;  %v595_v37 = vsel %vm3008_vm7, %v593_v27, %v594_v29  ;;  %v3090_v27 = vld [vmem:[%s3641_s3] ss:$0 sm:$0xff] }
  0x3e   :  { %v2365_v38 = vcombine.low %v586_v47, %v589_v34  ;;  %v2366_v39 = vcombine.low %v592_v36, %v595_v37  ;;  %v596_v42 = vrot.slane %v594_v29, 4  ;;  %v600_v45 = vrot.slane %v2983_v7, 5  ;;  %v2697_v7 = vld [vmem:[#allocation2 + $0x78] sm:$0xff]  }
  0x3f   :  { %v599_v43 = vrot.slane %v597_v35, 4  ;;  %2561 = vmatprep.subr.bf16.mxu1 %v2697_v7  ;;  %vm844_vm8 = vcmask 1043458   ;;  %vm859_vm9 = vcmask 1045508   ;;  %vm874_vm10 = vcmask 1047558  }
  0x40   :  { %2546 = vmatmul.mubr.msk.bf16.vlgmr.msra.gmra.mxu0 %vm257_vm3, %v2361_v22  ;;  %v598_v48 = vsel %vm3008_vm7, %v596_v42, %v597_v35  ;;  %2562 = vmatpush3.bf16.msra.mxu1 %v2697_v7  ;;  %vm1298_vm11 = vcmask 1040384   ;;  %vm1286_vm12 = vcmask 1043456   ;;  %vm1289_vm13 = vcmask 1044480  }
  0x41   :  { %2549 = vmatprep.mubr.msk.bf16.mxu0 %vm257_vm3, %v2362_v20  ;;  %v601_v63 = vsel %vm3008_vm7, %v599_v43, %v600_v45  ;;  %2586 = vmatpush3.bf16.msra.mxu0 %v2695_v15  ;;  %v3085_v20 = vld [vmem:[%s3640_s2] ss:$0 sm:$0xff]  ;;  %vm1292_vm14 = vcmask 1045504   ;;  %vm1295_vm15 = vcmask 1046528   ;;  %vm1391_vm1 = vsmask.f32 7424 }
  0x42   :  { %v2367_v49 = vcombine.low %v598_v48, %v601_v63  ;;  %2587 = vmatprep.subr.bf16.mxu0 %v2696_v50  ;;  %2563 = vmatprep.subr.bf16.mxu1 %v2699_v62  ;;  %vm1838_vm2 = vsmask.f32 6400 }
  0x44   :  { %2564 = vmatpush3.bf16.msra.mxu1 %v2699_v62 }
  0x45   :  { %2588 = vmatpush3.bf16.msra.mxu0 %v2696_v50  ;;  %2565 = vmatprep.subr.bf16.mxu1 %v2701_v40 }
  0x46   :  { %2589 = vmatprep.subr.bf16.mxu0 %v2698_v52 }
  0x48   :  { %2550 = vmatmul.mubr.msk.bf16.gmra.mxu0 %vm257_vm3, %v2363_v31  ;;  %2566 = vmatpush3.bf16.msra.mxu1 %v2701_v40 }
  0x49   :  { %2553 = vmatprep.mubr.msk.bf16.mxu0 %vm257_vm3, %v2364_v33  ;;  %2590 = vmatpush3.bf16.msra.mxu0 %v2698_v52 }
  0x4a   :  { %2591 = vmatprep.subr.bf16.mxu0 %v2700_v6  ;;  %2567 = vmatprep.subr.bf16.mxu1 %v2703_v18 }
  0x4c   :  { %2568 = vmatpush3.bf16.msra.mxu1 %v2703_v18 }
  0x4d   :  { %2592 = vmatpush3.bf16.msra.mxu0 %v2700_v6 }
  0x4e   :  { %2593 = vmatprep.subr.bf16.mxu0 %v2702_v46 }
  0x50   :  { %2554 = vmatmul.mubr.msk.bf16.gmra.mxu0 %vm257_vm3, %v2365_v38 }
  0x51   :  { %2557 = vmatprep.mubr.msk.bf16.mxu0 %vm257_vm3, %v2366_v39  ;;  %2594 = vmatpush3.bf16.msra.mxu0 %v2702_v46 }
  0x52   :  { %2595 = vmatprep.subr.bf16.mxu0 %v2704_v19 }
  0x55   :  { %2596 = vmatpush3.bf16.msra.mxu0 %v2704_v19 }
  0x58   :  { %2558 = vmatmul.mubr.msk.bf16.gmra.mxu0 %vm257_vm3, %v2367_v49  ;;  %vm2204_vm3 = vcmask 1047556  }
  0xd6   :  { %v2529_v53 = vpop.f32.mrf.mxu1 }
  0xd8   :  { %v484_v54 = vpop.f32.mrf.mxu1 }
  0xda   :  { %v2530_v55 = vpop.f32.mrf.mxu1 }
  0xdc   :  { %v487_v58 = vpop.f32.mrf.mxu1 }
  0xde   :  { %v2511_v44 = vpop.f32.mrf.mxu0 }
  0xdf   :  { %v2533_v60 = vpop.f32.mrf.mxu1  ;;  %v493_v22 = vadd.f32 %v2529_v53, %v2511_v44 }
  0xe0   :  { %v320_v57 = vpop.f32.mrf.mxu0 }
  0xe1   :  { %v500_v0 = vpop.f32.mrf.mxu1  ;;  %v485_v25 = vadd.f32 %v484_v54, %v320_v57 }
  0xe2   :  { %v2512_v2 = vpop.f32.mrf.mxu0 }
  0xe3   :  { %v2534_v3 = vpop.f32.mrf.mxu1  ;;  %v496_v51 = vadd.f32 %v2530_v55, %v2512_v2 }
  0xe4   :  { %v323_v59 = vpop.f32.mrf.mxu0 }
  0xe5   :  { %v503_v10 = vpop.f32.mrf.mxu1  ;;  %v488_v41 = vadd.f32 %v487_v58, %v323_v59 }
  0xe7   :  { %v2515_v5 = vpop.f32.mrf.mxu0 }
  0xe8   :  { %v2537_v12 = vpop.f32.mrf.mxu1  ;;  %v3093_v47 = vadd.f32 %v2533_v60, %v2515_v5 }
  0xe9   :  { %v336_v1 = vpop.f32.mrf.mxu0 }
  0xea   :  { %v516_v28 = vpop.f32.mrf.mxu1  ;;  %v3097_v37 = vadd.f32 %v500_v0, %v336_v1 }
  0xeb   :  { %v2516_v16 = vpop.f32.mrf.mxu0 }
  0xec   :  { %v2538_v61 = vpop.f32.mrf.mxu1  ;;  %v3099_v38 = vadd.f32 %v2534_v3, %v2516_v16 }
  0xed   :  { %v339_v4 = vpop.f32.mrf.mxu0 }
  0xee   :  { %v519_v23 = vpop.f32.mrf.mxu1  ;;  %v3101_v39 = vadd.f32 %v503_v10, %v339_v4 }
  0xef   :  { %v2519_v8 = vpop.f32.mrf.mxu0 }
  0xf0   :  { %v2541_v31 = vpop.f32.mrf.mxu1  ;;  %v3103_v42 = vadd.f32 %v2537_v12, %v2519_v8 }
  0xf1   :  { %v352_v11 = vpop.f32.mrf.mxu0 }
  0xf2   :  { %v3107_v15 = vadd.f32 %v516_v28, %v352_v11  ;;  %v532_v53 = vpop.f32.mrf.mxu1 }
  0xf3   :  { %v2520_v32 = vpop.f32.mrf.mxu0 }
  0xf4   :  { %v3109_v50 = vadd.f32 %v2538_v61, %v2520_v32  ;;  %v2542_v8 = vpop.f32.mrf.mxu1 }
  0xf5   :  { %v355_v13 = vpop.f32.mrf.mxu0 }
  0xf6   :  { %v3111_v7 = vadd.f32 %v519_v23, %v355_v13 }
  0xf8   :  { %v2523_v14 = vpop.f32.mrf.mxu0 }
  0xf9   :  { %v3113_v52 = vadd.f32 %v2541_v31, %v2523_v14  ;;  %v2706_v31 = vld [vmem:[#allocation2 + $0x8] sm:$0xff]  }
  0xfa   :  { %v368_v17 = vpop.f32.mrf.mxu0  ;;  %2597 = vmatprep.subr.bf16.mxu0 %v2706_v31 }
  0xfb   :  { %v3119_v62 = vadd.f32 %v532_v53, %v368_v17  ;;  %2598 = vmatpush3.bf16.msra.mxu0 %v2706_v31 }
  0xfc   :  { %v3078_v9 = vpop.f32.mrf.mxu0 }
  0xfe   :  { %v3080_v21 = vpop.f32.mrf.mxu0 }
 0x100   :  { %v2547_v24 = vpop.f32.mrf.mxu0 }
 0x101   :  { %v754_v26 = vadd.f32 %v2547_v24, %v493_v22 }
 0x102   :  { %v689_v29 = vpop.f32.mrf.mxu0 }
 0x103   :  { %v777_v56 = vmul.f32 %v3085_v20, %v754_v26  ;;  %v752_v30 = vadd.f32 %v689_v29, %v485_v25  ;;  %v2705_v26 = vld [vmem:[#allocation2 + $0x58] sm:$0xff]   ;;  %v535_v29 = vpop.f32.mrf.mxu1 }
 0x104   :  { %v2548_v33 = vpop.f32.mrf.mxu0  ;;  %2569 = vmatprep.subr.bf16.mxu1 %v2705_v26 }
 0x105   :  { %v800_v34 = vadd.f32 %v3090_v27, %v777_v56  ;;  %v775_v35 = vmul.f32 %v3085_v20, %v752_v30  ;;  %v755_v36 = vadd.f32 %v2548_v33, %v496_v51  ;;  %v2707_v33 = vld [vmem:[#allocation2 + $0x50] sm:$0xff]   ;;  %2570 = vmatpush3.bf16.msra.mxu1 %v2705_v26 }
 0x106   :  { %v692_v43 = vpop.f32.mrf.mxu0  ;;  %2571 = vmatprep.subr.bf16.mxu1 %v2707_v33 }
 0x107   :  { %v816_v45 = vmax.f32 %v800_v34, 0.0  ;;  %v798_v48 = vadd.f32 %v3090_v27, %v775_v35  ;;  %v778_v63 = vmul.f32 %v3085_v20, %v755_v36  ;;  %v753_v49 = vadd.f32 %v692_v43, %v488_v41 }
 0x108   :  { %v2551_v19 = vpop.f32.mrf.mxu0 }
 0x109   :  { %v945_v54 = vsel %vm282_vm0, %v816_v45, -inf  ;;  %v959_v55 = vsel %vm844_vm8, %v816_v45, -inf  ;;  %v973_v44 = vsel %vm859_vm9, %v816_v45, -inf  ;;  %v987_v57 = vsel %vm874_vm10, %v816_v45, -inf  ;;  %v2708_v45 = vld [vmem:[#allocation2] sm:$0xff]   ;;  %2572 = vmatpush3.bf16.msra.mxu1 %v2707_v33 }
 0x10a   :  { %v946_v58 = vrot.slane %v945_v54, 4  ;;  %v960_v2 = vrot.slane %v959_v55, 4  ;;  %v974_v59 = vrot.slane %v973_v44, 4  ;;  %v988_v60 = vrot.slane %v987_v57, 4  ;;  %2599 = vmatprep.subr.bf16.mxu0 %v2708_v45 }
 0x10b   :  { %v814_v5 = vmax.f32 %v798_v48, 0.0  ;;  %v801_v6 = vadd.f32 %v3090_v27, %v778_v63  ;;  %v776_v0 = vmul.f32 %v3085_v20, %v753_v49  ;;  %v758_v43 = vadd.f32 %v2551_v19, %v3093_v47  ;;  %v2709_v47 = vld [vmem:[#allocation2 + $0x48] sm:$0xff]   ;;  %2600 = vmatpush3.bf16.msra.mxu0 %v2708_v45 }
 0x10c   :  { %v947_v1 = vmax.f32 %v945_v54, %v946_v58  ;;  %v961_v16 = vmax.f32 %v959_v55, %v960_v2  ;;  %v975_v3 = vmax.f32 %v973_v44, %v974_v59  ;;  %v989_v4 = vmax.f32 %v987_v57, %v988_v60  ;;  %v705_v58 = vpop.f32.mrf.mxu0  ;;  %2573 = vmatprep.subr.bf16.mxu1 %v2709_v47 }
 0x10d   :  { %v830_v10 = vsel %vm282_vm0, %v814_v5, -inf  ;;  %v845_v11 = vsel %vm844_vm8, %v814_v5, -inf  ;;  %v860_v32 = vsel %vm859_vm9, %v814_v5, -inf  ;;  %v875_v12 = vsel %vm874_vm10, %v814_v5, -inf  ;;  %2574 = vmatpush3.bf16.msra.mxu1 %v2709_v47 }
 0x10e   :  { %v948_v13 = vrot.slane %v947_v1, 2  ;;  %v962_v28 = vrot.slane %v961_v16, 2  ;;  %v976_v14 = vrot.slane %v975_v3, 2  ;;  %v990_v40 = vrot.slane %v989_v4, 2 }
 0x10f   :  { %v831_v46 = vrot.slane %v830_v10, 4  ;;  %v846_v17 = vrot.slane %v845_v11, 4  ;;  %v861_v61 = vrot.slane %v860_v32, 4  ;;  %v876_v18 = vrot.slane %v875_v12, 4 }
 0x110   :  { %v949_v22 = vmax.f32 %v947_v1, %v948_v13  ;;  %v963_v23 = vmax.f32 %v961_v16, %v962_v28  ;;  %v977_v24 = vmax.f32 %v975_v3, %v976_v14  ;;  %v991_v25 = vmax.f32 %v989_v4, %v990_v40  ;;  %v2710_v1 = vld [vmem:[#allocation2 + $0xf8] sm:$0xff]  }
 0x111   :  { %v832_v51 = vmax.f32 %v830_v10, %v831_v46  ;;  %v847_v56 = vmax.f32 %v845_v11, %v846_v17  ;;  %v862_v30 = vmax.f32 %v860_v32, %v861_v61  ;;  %v877_v41 = vmax.f32 %v875_v12, %v876_v18  ;;  %2633 = vmatprep.subr.bf16.mxu0 %v2710_v1 }
 0x112   :  { %v950_v34 = vrot.slane %v949_v22, 1  ;;  %v964_v35 = vrot.slane %v963_v23, 1  ;;  %v978_v36 = vrot.slane %v977_v24, 1  ;;  %v3129_v54 = vadd.f32 %v2542_v8, %v3078_v9 }
 0x113   :  { %v833_v48 = vrot.slane %v832_v51, 2  ;;  %v848_v63 = vrot.slane %v847_v56, 2  ;;  %v863_v49 = vrot.slane %v862_v30, 2  ;;  %v878_v53 = vrot.slane %v877_v41, 2 }
 0x114   :  { %v3132_v55 = vadd.f32 %v535_v29, %v3080_v21  ;;  %v3134_v44 = vmax.f32 %v949_v22, %v950_v34  ;;  %v992_v57 = vrot.slane %v991_v25, 1  ;;  %v3140_v16 = vmax.f32 %v963_v23, %v964_v35 }
 0x115   :  { %v834_v2 = vmax.f32 %v832_v51, %v833_v48  ;;  %v849_v59 = vmax.f32 %v847_v56, %v848_v63  ;;  %v3136_v60 = vmax.f32 %v862_v30, %v863_v49  ;;  %v3138_v5 = vmax.f32 %v877_v41, %v878_v53  ;;  %v2713_v56 = vld [vmem:[#allocation2 + $0xb8] sm:$0xff]  }
 0x116   :  { %v3142_v9 = vmax.f32 %v977_v24, %v978_v36  ;;  %v817_v21 = vmax.f32 %v801_v6, 0.0  ;;  %v799_v3 = vadd.f32 %v3090_v27, %v776_v0  ;;  %v781_v10 = vmul.f32 %v3085_v20, %v758_v43  ;;  %v2711_v6 = vld [vmem:[#allocation2 + $0x40] sm:$0xff]  }
 0x117   :  { %v835_v4 = vrot.slane %v834_v2, 1  ;;  %v850_v8 = vrot.slane %v849_v59, 1  ;;  %v756_v11 = vadd.f32 %v705_v58, %v3097_v37  ;;  %v3151_v0 = vmax.f32 %v991_v25, %v992_v57  ;;  %2575 = vmatprep.subr.bf16.mxu1 %v2711_v6 }
 0x118   :  { %v1001_v32 = vsel %vm282_vm0, %v817_v21, -inf  ;;  %v1015_v12 = vsel %vm844_vm8, %v817_v21, -inf  ;;  %v1029_v13 = vsel %vm859_vm9, %v817_v21, -inf  ;;  %v1043_v28 = vsel %vm874_vm10, %v817_v21, -inf  ;;  %2576 = vmatpush3.bf16.msra.mxu1 %v2711_v6 }
 0x119   :  { %v836_v14 = vmax.f32 %v834_v2, %v835_v4  ;;  %v865_v40 = vrot.slane %v3136_v60, 1  ;;  %v880_v46 = vrot.slane %v3138_v5, 1  ;;  %v1002_v37 = vrot.slane %v1001_v32, 4  ;;  %2609 = vmatprep.subr.bf16.mxu1 %v2713_v56 }
 0x11a   :  { %v1016_v17 = vrot.slane %v1015_v12, 4  ;;  %v1030_v61 = vrot.slane %v1029_v13, 4  ;;  %v1044_v18 = vrot.slane %v1043_v28, 4  ;;  %v3155_v19 = vmax.f32 %v849_v59, %v850_v8 }
 0x11b   :  { %v815_v22 = vmax.f32 %v799_v3, 0.0  ;;  %v804_v23 = vadd.f32 %v3090_v27, %v781_v10  ;;  %v779_v24 = vmul.f32 %v3085_v20, %v756_v11  ;;  %v1003_v25 = vmax.f32 %v1001_v32, %v1002_v37 }
 0x11c   :  { %v1017_v26 = vmax.f32 %v1015_v12, %v1016_v17  ;;  %v1031_v29 = vmax.f32 %v1029_v13, %v1030_v61  ;;  %v1045_v51 = vmax.f32 %v1043_v28, %v1044_v18  ;;  %v3168_v3 = vmax.f32 %v3136_v60, %v865_v40  ;;  %v3178_v61 = vpop.f32.mrf.mxu0 }
 0x11d   :  { %v889_v30 = vsel %vm282_vm0, %v815_v22, -inf  ;;  %v903_v41 = vsel %vm844_vm8, %v815_v22, -inf  ;;  %v917_v31 = vsel %vm859_vm9, %v815_v22, -inf  ;;  %v931_v33 = vsel %vm874_vm10, %v815_v22, -inf }
 0x11e   :  { %v1004_v34 = vrot.slane %v1003_v25, 2  ;;  %v1018_v35 = vrot.slane %v1017_v26, 2  ;;  %v1032_v36 = vrot.slane %v1031_v29, 2  ;;  %v1046_v43 = vrot.slane %v1045_v51, 2 }
 0x11f   :  { %v890_v45 = vrot.slane %v889_v30, 4  ;;  %v904_v48 = vrot.slane %v903_v41, 4  ;;  %v918_v63 = vrot.slane %v917_v31, 4  ;;  %v932_v49 = vrot.slane %v931_v33, 4 }
 0x120   :  { %v1005_v53 = vmax.f32 %v1003_v25, %v1004_v34  ;;  %v3163_v57 = vmax.f32 %v1017_v26, %v1018_v35  ;;  %v3165_v58 = vmax.f32 %v1031_v29, %v1032_v36  ;;  %v1047_v47 = vmax.f32 %v1045_v51, %v1046_v43 }
 0x121   :  { %v891_v2 = vmax.f32 %v889_v30, %v890_v45  ;;  %v905_v59 = vmax.f32 %v903_v41, %v904_v48  ;;  %v919_v1 = vmax.f32 %v917_v31, %v918_v63  ;;  %v933_v21 = vmax.f32 %v931_v33, %v932_v49  ;;  %v708_v33 = vpop.f32.mrf.mxu0 }
 0x122   :  { %3657 = vst [vmem:[#allocation5_spill] sm:$0xff] %v3165_v58  ;;  %v3171_v4 = vmax.f32 %v3138_v5, %v880_v46  ;;  %v3174_v8 = vsel %vm282_vm0, 0.0, %v836_v14  ;;  %v1006_v10 = vrot.slane %v1005_v53, 1  ;;  %v1048_v11 = vrot.slane %v1047_v47, 1 }
 0x123   :  { %v892_v32 = vrot.slane %v891_v2, 2  ;;  %v920_v12 = vrot.slane %v919_v1, 2  ;;  %v934_v13 = vrot.slane %v933_v21, 2  ;;  %v906_v37 = vrot.slane %v905_v59, 2 }
 0x124   :  { %v820_v17 = vmax.f32 %v804_v23, 0.0  ;;  %v802_v14 = vadd.f32 %v3090_v27, %v779_v24  ;;  %v3185_v26 = vmax.f32 %v1005_v53, %v1006_v10  ;;  %v3187_v29 = vmax.f32 %v1047_v47, %v1048_v11 }
 0x125   :  { %v893_v60 = vmax.f32 %v891_v2, %v892_v32  ;;  %v921_v40 = vmax.f32 %v919_v1, %v920_v12  ;;  %v935_v5 = vmax.f32 %v933_v21, %v934_v13  ;;  %v3189_v34 = vmax.f32 %v905_v59, %v906_v37  ;;  %v2555_v32 = vpop.f32.mrf.mxu0 }
 0x126   :  { %v1169_v46 = vsel %vm282_vm0, %v820_v17, -inf  ;;  %v1183_v18 = vsel %vm844_vm8, %v820_v17, -inf  ;;  %v1197_v22 = vsel %vm859_vm9, %v820_v17, -inf  ;;  %v1211_v25 = vsel %vm874_vm10, %v820_v17, -inf }
 0x127   :  { %v922_v23 = vrot.slane %v921_v40, 1  ;;  %v936_v51 = vrot.slane %v935_v5, 1  ;;  %v1170_v56 = vrot.slane %v1169_v46, 4  ;;  %v1184_v30 = vrot.slane %v1183_v18, 4 }
 0x128   :  { %v1198_v41 = vrot.slane %v1197_v22, 4  ;;  %v1212_v31 = vrot.slane %v1211_v25, 4  ;;  %v894_v24 = vrot.slane %v893_v60, 1  ;;  %v818_v36 = vmax.f32 %v802_v14, 0.0 }
 0x129   :  { %v923_v35 = vmax.f32 %v921_v40, %v922_v23  ;;  %v1171_v43 = vmax.f32 %v1169_v46, %v1170_v56  ;;  %v1185_v45 = vmax.f32 %v1183_v18, %v1184_v30  ;;  %v937_v49 = vmax.f32 %v935_v5, %v936_v51 }
 0x12a   :  { %v1199_v48 = vmax.f32 %v1197_v22, %v1198_v41  ;;  %v1213_v63 = vmax.f32 %v1211_v25, %v1212_v31  ;;  %v1057_v53 = vsel %vm282_vm0, %v818_v36, -inf  ;;  %v1071_v47 = vsel %vm844_vm8, %v818_v36, -inf  ;;  %v721_v41 = vpop.f32.mrf.mxu0 }
 0x12b   :  { %v1085_v2 = vsel %vm859_vm9, %v818_v36, -inf  ;;  %v1172_v1 = vrot.slane %v1171_v43, 2  ;;  %v1186_v21 = vrot.slane %v1185_v45, 2  ;;  %v1058_v59 = vrot.slane %v1057_v53, 4 }
 0x12c   :  { %v1200_v10 = vrot.slane %v1199_v48, 2  ;;  %v1214_v11 = vrot.slane %v1213_v63, 2  ;;  %v1072_v12 = vrot.slane %v1071_v47, 4  ;;  %v1086_v13 = vrot.slane %v1085_v2, 4 }
 0x12d   :  { %v1099_v37 = vsel %vm874_vm10, %v818_v36, -inf  ;;  %v1173_v17 = vmax.f32 %v1171_v43, %v1172_v1  ;;  %v1187_v40 = vmax.f32 %v1185_v45, %v1186_v21  ;;  %v1059_v46 = vmax.f32 %v1057_v53, %v1058_v59 }
 0x12e   :  { %v1201_v14 = vmax.f32 %v1199_v48, %v1200_v10  ;;  %v1215_v5 = vmax.f32 %v1213_v63, %v1214_v11  ;;  %v1073_v18 = vmax.f32 %v1071_v47, %v1072_v12  ;;  %v1087_v22 = vmax.f32 %v1085_v2, %v1086_v13  ;;  %v2556_v10 = vpop.f32.mrf.mxu0 }
 0x12f   :  { %v1100_v25 = vrot.slane %v1099_v37, 4  ;;  %v3195_v23 = vmax.f32 %v893_v60, %v894_v24  ;;  %v3199_v56 = vsel %vm1298_vm11, %v923_v35, %v937_v49  ;;  %v1174_v30 = vrot.slane %v1173_v17, 1 }
 0x130   :  { %v1060_v31 = vrot.slane %v1059_v46, 2  ;;  %v1074_v6 = vrot.slane %v1073_v18, 2  ;;  %v1088_v36 = vrot.slane %v1087_v22, 2  ;;  %v1188_v48 = vrot.slane %v1187_v40, 1 }
 0x131   :  { %v1101_v43 = vmax.f32 %v1099_v37, %v1100_v25  ;;  %v3201_v45 = vmax.f32 %v1173_v17, %v1174_v30  ;;  %v1202_v63 = vrot.slane %v1201_v14, 1  ;;  %v1216_v53 = vrot.slane %v1215_v5, 1 }
 0x132   :  { %v1061_v47 = vmax.f32 %v1059_v46, %v1060_v31  ;;  %v1075_v2 = vmax.f32 %v1073_v18, %v1074_v6  ;;  %v1089_v60 = vmax.f32 %v1087_v22, %v1088_v36  ;;  %v759_v1 = vadd.f32 %v3178_v61, %v3099_v38  ;;  %v724_v22 = vpop.f32.mrf.mxu0 }
 0x133   :  { %v1102_v24 = vrot.slane %v1101_v43, 2  ;;  %v757_v35 = vadd.f32 %v708_v33, %v3101_v39  ;;  %v762_v49 = vadd.f32 %v2555_v32, %v3103_v42  ;;  %v760_v21 = vadd.f32 %v721_v41, %v3107_v15 }
 0x134   :  { %v1062_v11 = vrot.slane %v1061_v47, 1  ;;  %v1076_v59 = vrot.slane %v1075_v2, 1  ;;  %v1090_v12 = vrot.slane %v1089_v60, 1  ;;  %v782_v37 = vmul.f32 %v3085_v20, %v759_v1 }
 0x135   :  { %v1103_v13 = vmax.f32 %v1101_v43, %v1102_v24  ;;  %v780_v6 = vmul.f32 %v3085_v20, %v757_v35  ;;  %v785_v17 = vmul.f32 %v3085_v20, %v762_v49  ;;  %v783_v46 = vmul.f32 %v3085_v20, %v760_v21 }
 0x136   :  { %v3212_v38 = vmax.f32 %v1187_v40, %v1188_v48  ;;  %v1063_v39 = vmax.f32 %v1061_v47, %v1062_v11  ;;  %v1077_v61 = vmax.f32 %v1075_v2, %v1076_v59  ;;  %v805_v15 = vadd.f32 %v3090_v27, %v782_v37 }
 0x137   :  { %v1104_v42 = vrot.slane %v1103_v13, 1  ;;  %v803_v33 = vadd.f32 %v3090_v27, %v780_v6  ;;  %v808_v32 = vadd.f32 %v3090_v27, %v785_v17  ;;  %v806_v18 = vadd.f32 %v3090_v27, %v783_v46 }
 0x138   :  { %v3218_v25 = vmax.f32 %v1201_v14, %v1202_v63  ;;  %v3220_v30 = vmax.f32 %v1215_v5, %v1216_v53  ;;  %v1091_v41 = vmax.f32 %v1089_v60, %v1090_v12  ;;  %v1313_v40 = vsel %vm1298_vm11, %v3187_v29, %v1063_v39 }
 0x139   :  { %v1105_v31 = vmax.f32 %v1103_v13, %v1104_v42  ;;  %v1315_v36 = vsel %vm282_vm0, %v1313_v40, %v1077_v61  ;;  %v821_v43 = vmax.f32 %v805_v15, 0.0  ;;  %v819_v48 = vmax.f32 %v803_v33, 0.0 }
 0x13a   :  { %v1317_v47 = vsel %vm549_vm5, %v1315_v36, %v1091_v41  ;;  %v3226_v2 = vmax.f32 %v808_v32, 0.0  ;;  %v763_v24 = vadd.f32 %v2556_v10, %v3109_v50  ;;  %v761_v14 = vadd.f32 %v724_v22, %v3111_v7 }
 0x13b   :  { %v1225_v5 = vsel %vm282_vm0, %v821_v43, -inf  ;;  %v1239_v63 = vsel %vm844_vm8, %v821_v43, -inf  ;;  %v1253_v53 = vsel %vm859_vm9, %v821_v43, -inf  ;;  %v3233_v29 = vmax.f32 %v806_v18, 0.0 }
 0x13c   :  { %v1226_v60 = vrot.slane %v1225_v5, 4  ;;  %v1240_v1 = vrot.slane %v1239_v63, 4  ;;  %v1254_v35 = vrot.slane %v1253_v53, 4  ;;  %v1267_v49 = vsel %vm874_vm10, %v821_v43, -inf }
 0x13d   :  { %v1268_v21 = vrot.slane %v1267_v49, 4  ;;  %v1113_v11 = vsel %vm282_vm0, %v819_v48, -inf  ;;  %v1127_v50 = vsel %vm844_vm8, %v819_v48, -inf  ;;  %v1141_v7 = vsel %vm859_vm9, %v819_v48, -inf }
 0x13e   :  { %v1227_v10 = vmax.f32 %v1225_v5, %v1226_v60  ;;  %v1241_v59 = vmax.f32 %v1239_v63, %v1240_v1  ;;  %v1255_v12 = vmax.f32 %v1253_v53, %v1254_v35  ;;  %v1114_v13 = vrot.slane %v1113_v11, 4 }
 0x13f   :  { %v1269_v37 = vmax.f32 %v1267_v49, %v1268_v21  ;;  %v1128_v6 = vrot.slane %v1127_v50, 4  ;;  %v1142_v17 = vrot.slane %v1141_v7, 4  ;;  %v1155_v46 = vsel %vm874_vm10, %v819_v48, -inf }
 0x140   :  { %v1228_v39 = vrot.slane %v1227_v10, 2  ;;  %v1242_v61 = vrot.slane %v1241_v59, 2  ;;  %v1256_v42 = vrot.slane %v1255_v12, 2  ;;  %v1115_v15 = vmax.f32 %v1113_v11, %v1114_v13 }
 0x141   :  { %v1270_v33 = vrot.slane %v1269_v37, 2  ;;  %v1129_v32 = vmax.f32 %v1127_v50, %v1128_v6  ;;  %v1143_v18 = vmax.f32 %v1141_v7, %v1142_v17  ;;  %v1156_v22 = vrot.slane %v1155_v46, 4 }
 0x142   :  { %v1229_v41 = vmax.f32 %v1227_v10, %v1228_v39  ;;  %v1243_v40 = vmax.f32 %v1241_v59, %v1242_v61  ;;  %v1257_v36 = vmax.f32 %v1255_v12, %v1256_v42  ;;  %v1116_v43 = vrot.slane %v1115_v15, 2 }
 0x143   :  { %v1271_v5 = vmax.f32 %v1269_v37, %v1270_v33  ;;  %v1130_v63 = vrot.slane %v1129_v32, 2  ;;  %v1144_v53 = vrot.slane %v1143_v18, 2  ;;  %v1157_v60 = vmax.f32 %v1155_v46, %v1156_v22 }
 0x144   :  { %v1230_v1 = vrot.slane %v1229_v41, 1  ;;  %v1244_v35 = vrot.slane %v1243_v40, 1  ;;  %v1258_v49 = vrot.slane %v1257_v36, 1  ;;  %v1117_v48 = vmax.f32 %v1115_v15, %v1116_v43 }
 0x145   :  { %v1272_v21 = vrot.slane %v1271_v5, 1  ;;  %v1131_v28 = vmax.f32 %v1129_v32, %v1130_v63  ;;  %v1145_v51 = vmax.f32 %v1143_v18, %v1144_v53  ;;  %v1158_v11 = vrot.slane %v1157_v60, 2 }
 0x146   :  { %v3241_v50 = vsel %vm1286_vm12, %v1317_v47, %v1105_v31  ;;  %v1118_v7 = vrot.slane %v1117_v48, 1  ;;  %v3244_v10 = vmul.f32 %v3085_v20, %v763_v24  ;;  %v3247_v59 = vmul.f32 %v3085_v20, %v761_v14 }
 0x147   :  { %v3249_v12 = vmax.f32 %v1229_v41, %v1230_v1  ;;  %v3251_v13 = vmax.f32 %v1243_v40, %v1244_v35  ;;  %v1273_v37 = vmax.f32 %v1271_v5, %v1272_v21  ;;  %v1159_v6 = vmax.f32 %v1157_v60, %v1158_v11 }
 0x148   :  { %v3253_v17 = vmax.f32 %v1257_v36, %v1258_v49  ;;  %v952_v46 = vsel %vm282_vm0, %v3226_v2, -inf  ;;  %v966_v31 = vsel %vm844_vm8, %v3226_v2, -inf  ;;  %v980_v47 = vsel %vm859_vm9, %v3226_v2, -inf }
 0x149   :  { %3658 = vst [vmem:[#allocation6_spill] sm:$0xff] %v3251_v13  ;;  %v3261_v24 = vmax.f32 %v1117_v48, %v1118_v7  ;;  %v1132_v14 = vrot.slane %v1131_v28, 1  ;;  %v1146_v39 = vrot.slane %v1145_v51, 1  ;;  %v1160_v61 = vrot.slane %v1159_v6, 1 }
 0x14a   :  { %3659 = vst [vmem:[#allocation7_spill] sm:$0xff] %v3253_v17  ;;  %v3264_v42 = vsel %vm1298_vm11, %v1273_v37, 0.0  ;;  %v953_v15 = vrot.slane %v952_v46, 4  ;;  %v967_v33 = vrot.slane %v966_v31, 4  ;;  %v981_v32 = vrot.slane %v980_v47, 4 }
 0x14b   :  { %3660 = vst [vmem:[#allocation8_spill] sm:$0xff] %v3264_v42  ;;  %v1161_v18 = vmax.f32 %v1159_v6, %v1160_v61  ;;  %v994_v22 = vsel %vm874_vm10, %v3226_v2, -inf  ;;  %v837_v41 = vsel %vm282_vm0, %v3233_v29, -inf  ;;  %v852_v40 = vsel %vm844_vm8, %v3233_v29, -inf }
 0x14c   :  { %v954_v36 = vmax.f32 %v952_v46, %v953_v15  ;;  %v968_v43 = vmax.f32 %v966_v31, %v967_v33  ;;  %v982_v5 = vmax.f32 %v980_v47, %v981_v32  ;;  %v995_v63 = vrot.slane %v994_v22, 4 }
 0x14d   :  { %v3272_v53 = vmax.f32 %v1131_v28, %v1132_v14  ;;  %v838_v60 = vrot.slane %v837_v41, 4  ;;  %v853_v1 = vrot.slane %v852_v40, 4  ;;  %v867_v35 = vsel %vm859_vm9, %v3233_v29, -inf }
 0x14e   :  { %v1327_v2 = vsel %vm1298_vm11, %v1161_v18, %v3201_v45  ;;  %v955_v49 = vrot.slane %v954_v36, 2  ;;  %v969_v48 = vrot.slane %v968_v43, 2  ;;  %v983_v21 = vrot.slane %v982_v5, 2 }
 0x14f   :  { %v996_v11 = vmax.f32 %v994_v22, %v995_v63  ;;  %v839_v7 = vmax.f32 %v837_v41, %v838_v60  ;;  %v854_v37 = vmax.f32 %v852_v40, %v853_v1  ;;  %v868_v6 = vrot.slane %v867_v35, 4  ;;  %v2559_v40 = vpop.f32.mrf.mxu0 }
 0x150   :  { %v956_v46 = vmax.f32 %v954_v36, %v955_v49  ;;  %v970_v31 = vmax.f32 %v968_v43, %v969_v48  ;;  %v984_v47 = vmax.f32 %v982_v5, %v983_v21  ;;  %v882_v28 = vsel %vm874_vm10, %v3233_v29, -inf }
 0x151   :  { %v997_v14 = vrot.slane %v996_v11, 2  ;;  %v840_v61 = vrot.slane %v839_v7, 2  ;;  %v855_v15 = vrot.slane %v854_v37, 2  ;;  %v869_v33 = vmax.f32 %v867_v35, %v868_v6 }
 0x152   :  { %v957_v32 = vrot.slane %v956_v46, 1  ;;  %v971_v17 = vrot.slane %v970_v31, 1  ;;  %v985_v45 = vrot.slane %v984_v47, 1  ;;  %v883_v18 = vrot.slane %v882_v28, 4 }
 0x153   :  { %v998_v13 = vmax.f32 %v996_v11, %v997_v14  ;;  %v841_v58 = vmax.f32 %v839_v7, %v840_v61  ;;  %v856_v22 = vmax.f32 %v854_v37, %v855_v15  ;;  %v870_v41 = vrot.slane %v869_v33, 2  ;;  %v737_v7 = vpop.f32.mrf.mxu0 }
 0x154   :  { %v3281_v43 = vmax.f32 %v1145_v51, %v1146_v39  ;;  %v3285_v29 = vsel %vm282_vm0, %v1327_v2, %v3212_v38  ;;  %v884_v5 = vmax.f32 %v882_v28, %v883_v18  ;;  %v809_v48 = vadd.f32 %v3090_v27, %v3244_v10 }
 0x155   :  { %v999_v63 = vrot.slane %v998_v13, 1  ;;  %v842_v60 = vrot.slane %v841_v58, 1  ;;  %v857_v1 = vrot.slane %v856_v22, 1  ;;  %v871_v35 = vmax.f32 %v869_v33, %v870_v41 }
 0x156   :  { %v885_v49 = vrot.slane %v884_v5, 2  ;;  %v807_v21 = vadd.f32 %v3090_v27, %v3247_v59  ;;  %v766_v11 = vadd.f32 %v2559_v40, %v3113_v52  ;;  %v3292_v51 = vmax.f32 %v956_v46, %v957_v32 }
 0x157   :  { %v3294_v39 = vmax.f32 %v970_v31, %v971_v17  ;;  %v3296_v38 = vmax.f32 %v984_v47, %v985_v45  ;;  %v872_v2 = vrot.slane %v871_v35, 1  ;;  %v3298_v37 = vmax.f32 %v998_v13, %v999_v63 }
 0x158   :  { %3661 = vst [vmem:[#allocation9_spill] sm:$0xff] %v3292_v51  ;;  %v886_v6 = vmax.f32 %v884_v5, %v885_v49  ;;  %v825_v28 = vmax.f32 %v809_v48, 0.0  ;;  %v823_v14 = vmax.f32 %v807_v21, 0.0  ;;  %v843_v61 = vmax.f32 %v841_v58, %v842_v60 }
 0x159   :  { %3662 = vst [vmem:[#allocation10_spill] sm:$0xff] %v3294_v39  ;;  %3663 = vst [vmem:[#allocation11_spill] sm:$0xff] %v3296_v38  ;;  %v3300_v10 = vmax.f32 %v856_v22, %v857_v1  ;;  %v3302_v15 = vmax.f32 %v871_v35, %v872_v2  ;;  %v789_v52 = vmul.f32 %v3085_v20, %v766_v11 }
 0x15a   :  { %3664 = vst [vmem:[#allocation12_spill] sm:$0xff] %v3298_v37  ;;  %v1008_v59 = vsel %vm282_vm0, %v825_v28, -inf  ;;  %v1022_v17 = vsel %vm844_vm8, %v825_v28, -inf  ;;  %v1036_v46 = vsel %vm859_vm9, %v825_v28, -inf  ;;  %v764_v31 = vadd.f32 %v737_v7, %v3119_v62  ;;  %v2560_v37 = vpop.f32.mrf.mxu0 }
 0x15b   :  { %3665 = vst [vmem:[#allocation13_spill] sm:$0xff] %v3302_v15  ;;  %v1009_v13 = vrot.slane %v1008_v59, 4  ;;  %v1023_v47 = vrot.slane %v1022_v17, 4  ;;  %v1037_v33 = vrot.slane %v1036_v46, 4  ;;  %v1050_v32 = vsel %vm874_vm10, %v825_v28, -inf }
 0x15c   :  { %v887_v58 = vrot.slane %v886_v6, 1  ;;  %v1051_v45 = vrot.slane %v1050_v32, 4  ;;  %v896_v18 = vsel %vm282_vm0, %v823_v14, -inf  ;;  %v910_v22 = vsel %vm844_vm8, %v823_v14, -inf }
 0x15d   :  { %v1010_v41 = vmax.f32 %v1008_v59, %v1009_v13  ;;  %v1024_v40 = vmax.f32 %v1022_v17, %v1023_v47  ;;  %v1038_v5 = vmax.f32 %v1036_v46, %v1037_v33  ;;  %v897_v63 = vrot.slane %v896_v18, 4 }
 0x15e   :  { %v1052_v60 = vmax.f32 %v1050_v32, %v1051_v45  ;;  %v911_v1 = vrot.slane %v910_v22, 4  ;;  %v924_v35 = vsel %vm859_vm9, %v823_v14, -inf  ;;  %v938_v62 = vsel %vm874_vm10, %v823_v14, -inf }
 0x15f   :  { %v1011_v49 = vrot.slane %v1010_v41, 2  ;;  %v1025_v48 = vrot.slane %v1024_v40, 2  ;;  %v1039_v21 = vrot.slane %v1038_v5, 2  ;;  %v898_v11 = vmax.f32 %v896_v18, %v897_v63 }
 0x160   :  { %v1053_v2 = vrot.slane %v1052_v60, 2  ;;  %v912_v7 = vmax.f32 %v910_v22, %v911_v1  ;;  %v925_v28 = vrot.slane %v924_v35, 4  ;;  %v939_v36 = vrot.slane %v938_v62, 4 }
 0x161   :  { %v1012_v42 = vmax.f32 %v1010_v41, %v1011_v49  ;;  %v3314_v59 = vmax.f32 %v1024_v40, %v1025_v48  ;;  %v3316_v17 = vmax.f32 %v1038_v5, %v1039_v21  ;;  %v899_v46 = vrot.slane %v898_v11, 2 }
 0x162   :  { %v1054_v13 = vmax.f32 %v1052_v60, %v1053_v2  ;;  %v913_v47 = vrot.slane %v912_v7, 2  ;;  %v926_v33 = vmax.f32 %v924_v35, %v925_v28  ;;  %v940_v32 = vmax.f32 %v938_v62, %v939_v36 }
 0x163   :  { %3666 = vst [vmem:[#allocation14_spill] sm:$0xff] %v3314_v59  ;;  %3667 = vst [vmem:[#allocation15_spill] sm:$0xff] %v3316_v17  ;;  %v3319_v14 = vsel %vm282_vm0, 0.0, %v843_v61  ;;  %v1013_v45 = vrot.slane %v1012_v42, 1  ;;  %v900_v18 = vmax.f32 %v898_v11, %v899_v46  ;;  %v767_v22 = vadd.f32 %v2560_v37, %v3129_v54 }
 0x164   :  { %v1055_v63 = vrot.slane %v1054_v13, 1  ;;  %v3322_v1 = vmax.f32 %v912_v7, %v913_v47  ;;  %v927_v41 = vrot.slane %v926_v33, 2  ;;  %v941_v40 = vrot.slane %v940_v32, 2 }
 0x165   :  { %v3324_v49 = vmax.f32 %v886_v6, %v887_v58  ;;  %v812_v60 = vadd.f32 %v3090_v27, %v789_v52  ;;  %v787_v36 = vmul.f32 %v3085_v20, %v764_v31  ;;  %v901_v35 = vrot.slane %v900_v18, 1  ;;  %v740_v6 = vpop.f32.mrf.mxu0 }
 0x166   :  { %v928_v62 = vmax.f32 %v926_v33, %v927_v41  ;;  %v942_v48 = vmax.f32 %v940_v32, %v941_v40  ;;  %v3330_v21 = vmax.f32 %v1012_v42, %v1013_v45  ;;  %v3332_v54 = vmax.f32 %v1054_v13, %v1055_v63 }
 0x167   :  { %3668 = vst [vmem:[#allocation16_spill] sm:$0xff] %v3324_v49  ;;  %v828_v37 = vmax.f32 %v812_v60, 0.0  ;;  %v810_v11 = vadd.f32 %v3090_v27, %v787_v36  ;;  %v790_v52 = vmul.f32 %v3085_v20, %v767_v22  ;;  %v3341_v13 = vmax.f32 %v900_v18, %v901_v35 }
 0x168   :  { %3669 = vst [vmem:[#allocation17_spill] sm:$0xff] %v3330_v21  ;;  %v929_v2 = vrot.slane %v928_v62, 1  ;;  %v943_v7 = vrot.slane %v942_v48, 1  ;;  %v765_v32 = vadd.f32 %v740_v6, %v3132_v55 }
 0x169   :  { %v1176_v31 = vsel %vm282_vm0, %v828_v37, -inf  ;;  %v1190_v28 = vsel %vm844_vm8, %v828_v37, -inf  ;;  %v1204_v46 = vsel %vm859_vm9, %v828_v37, -inf  ;;  %v1218_v42 = vsel %vm874_vm10, %v828_v37, -inf  ;;  %3670 = vst [vmem:[#allocation18_spill] sm:$0xff] %v3341_v13 }
 0x16a   :  { %v1177_v47 = vrot.slane %v1176_v31, 4  ;;  %v1191_v33 = vrot.slane %v1190_v28, 4  ;;  %v930_v45 = vmax.f32 %v928_v62, %v929_v2  ;;  %v1205_v63 = vrot.slane %v1204_v46, 4 }
 0x16b   :  { %v1219_v41 = vrot.slane %v1218_v42, 4  ;;  %v826_v40 = vmax.f32 %v810_v11, 0.0  ;;  %v944_v60 = vmax.f32 %v942_v48, %v943_v7  ;;  %v813_v61 = vadd.f32 %v3090_v27, %v790_v52 }
 0x16c   :  { %v1178_v22 = vmax.f32 %v1176_v31, %v1177_v47  ;;  %v1192_v36 = vmax.f32 %v1190_v28, %v1191_v33  ;;  %v1206_v5 = vmax.f32 %v1204_v46, %v1205_v63 }
 0x16d   :  { %v1220_v58 = vmax.f32 %v1218_v42, %v1219_v41  ;;  %v1064_v17 = vsel %vm282_vm0, %v826_v40, -inf  ;;  %v1078_v18 = vsel %vm844_vm8, %v826_v40, -inf  ;;  %v1092_v6 = vsel %vm859_vm9, %v826_v40, -inf }
 0x16e   :  { %v1179_v35 = vrot.slane %v1178_v22, 2  ;;  %v1193_v37 = vrot.slane %v1192_v36, 2  ;;  %v1065_v21 = vrot.slane %v1064_v17, 4  ;;  %v1079_v38 = vrot.slane %v1078_v18, 4 }
 0x16f   :  { %v1207_v55 = vrot.slane %v1206_v5, 2  ;;  %v1221_v62 = vrot.slane %v1220_v58, 2  ;;  %v1106_v48 = vsel %vm874_vm10, %v826_v40, -inf  ;;  %v1093_v46 = vrot.slane %v1092_v6, 4 }
 0x170   :  { %v1180_v11 = vmax.f32 %v1178_v22, %v1179_v35  ;;  %v1194_v2 = vmax.f32 %v1192_v36, %v1193_v37  ;;  %v1066_v7 = vmax.f32 %v1064_v17, %v1065_v21  ;;  %v1080_v52 = vmax.f32 %v1078_v18, %v1079_v38 }
 0x171   :  { %v1208_v31 = vmax.f32 %v1206_v5, %v1207_v55  ;;  %v1222_v28 = vmax.f32 %v1220_v58, %v1221_v62  ;;  %v1107_v42 = vrot.slane %v1106_v48, 4  ;;  %v788_v41 = vmul.f32 %v3085_v20, %v765_v32 }
 0x172   :  { %v1181_v47 = vrot.slane %v1180_v11, 1  ;;  %v1067_v33 = vrot.slane %v1066_v7, 2  ;;  %v1081_v63 = vrot.slane %v1080_v52, 2  ;;  %v1195_v13 = vrot.slane %v1194_v2, 1 }
 0x173   :  { %v1209_v39 = vrot.slane %v1208_v31, 1  ;;  %v1094_v49 = vmax.f32 %v1092_v6, %v1093_v46  ;;  %v1108_v51 = vmax.f32 %v1106_v48, %v1107_v42  ;;  %v1223_v15 = vrot.slane %v1222_v28, 1 }
 0x174   :  { %v1068_v59 = vmax.f32 %v1066_v7, %v1067_v33  ;;  %v1082_v40 = vmax.f32 %v1080_v52, %v1081_v63  ;;  %v3671_v22 = vrot.slane %v3189_v34, 1  ;;  %v3356_v17 = vsel %vm1298_vm11, %v930_v45, %v944_v60 }
 0x175   :  { %v3358_v5 = vmax.f32 %v1180_v11, %v1181_v47  ;;  %v1095_v21 = vrot.slane %v1094_v49, 2  ;;  %v1109_v58 = vrot.slane %v1108_v51, 2  ;;  %v829_v36 = vmax.f32 %v813_v61, 0.0 }
 0x176   :  { %v3353_v38 = vmax.f32 %v3189_v34, %v3671_v22  ;;  %v1069_v20 = vrot.slane %v1068_v59, 1  ;;  %v1083_v32 = vrot.slane %v1082_v40, 1  ;;  %v811_v18 = vadd.f32 %v3090_v27, %v788_v41 }
 0x177   :  { %v3361_v35 = vmax.f32 %v1194_v2, %v1195_v13  ;;  %v3363_v37 = vmax.f32 %v1208_v31, %v1209_v39  ;;  %v1096_v55 = vmax.f32 %v1094_v49, %v1095_v21  ;;  %v1110_v62 = vmax.f32 %v1108_v51, %v1109_v58 }
 0x178   :  { %v3365_v34 = vmax.f32 %v1222_v28, %v1223_v15  ;;  %v1070_v6 = vmax.f32 %v1068_v59, %v1069_v20  ;;  %v1232_v45 = vsel %vm282_vm0, %v829_v36, -inf  ;;  %v1246_v60 = vsel %vm844_vm8, %v829_v36, -inf }
 0x179   :  { %v1097_v48 = vrot.slane %v1096_v55, 1  ;;  %v1233_v11 = vrot.slane %v1232_v45, 4  ;;  %v1247_v7 = vrot.slane %v1246_v60, 4  ;;  %v3672_v61 = vrot.slane %v3163_v57, 1 }
 0x17a   :  { %v1084_v13 = vmax.f32 %v1082_v40, %v1083_v32  ;;  %v1260_v39 = vsel %vm859_vm9, %v829_v36, -inf  ;;  %v1274_v51 = vsel %vm874_vm10, %v829_v36, -inf  ;;  %v827_v15 = vmax.f32 %v811_v18, 0.0 }
 0x17b   :  { %v3372_v27 = vmax.f32 %v3163_v57, %v3672_v61  ;;  %v1111_v49 = vrot.slane %v1110_v62, 1  ;;  %v1314_v59 = vsel %vm1298_vm11, %v3332_v54, %v1070_v6  ;;  %v1234_v2 = vmax.f32 %v1232_v45, %v1233_v11 }
 0x17c   :  { %v1284_v52 = vsel %vm549_vm5, %v3174_v8, %v3155_v19  ;;  %v1248_v31 = vmax.f32 %v1246_v60, %v1247_v7  ;;  %v1261_v28 = vrot.slane %v1260_v39, 4  ;;  %v1275_v57 = vrot.slane %v1274_v51, 4 }
 0x17d   :  { %v1120_v46 = vsel %vm282_vm0, %v827_v15, -inf  ;;  %v1098_v42 = vmax.f32 %v1096_v55, %v1097_v48  ;;  %v1235_v47 = vrot.slane %v1234_v2, 2  ;;  %v1134_v63 = vsel %vm844_vm8, %v827_v15, -inf }
 0x17e   :  { %v1121_v33 = vrot.slane %v1120_v46, 4  ;;  %v1316_v41 = vsel %vm282_vm0, %v1314_v59, %v1084_v13  ;;  %v1249_v54 = vrot.slane %v1248_v31, 2  ;;  %v1262_v40 = vmax.f32 %v1260_v39, %v1261_v28 }
 0x17f   :  { %v1276_v22 = vmax.f32 %v1274_v51, %v1275_v57  ;;  %v1236_v21 = vmax.f32 %v1234_v2, %v1235_v47  ;;  %v1135_v19 = vrot.slane %v1134_v63, 4  ;;  %v1148_v8 = vsel %vm859_vm9, %v827_v15, -inf }
 0x180   :  { %v1122_v58 = vmax.f32 %v1120_v46, %v1121_v33  ;;  %v1250_v20 = vmax.f32 %v1248_v31, %v1249_v54  ;;  %v1263_v32 = vrot.slane %v1262_v40, 2  ;;  %v1149_v18 = vrot.slane %v1148_v8, 4 }
 0x181   :  { %v1277_v36 = vrot.slane %v1276_v22, 2  ;;  %v1112_v55 = vmax.f32 %v1110_v62, %v1111_v49  ;;  %v1136_v45 = vmax.f32 %v1134_v63, %v1135_v19  ;;  %v1162_v60 = vsel %vm874_vm10, %v827_v15, -inf }
 0x182   :  { %v1123_v6 = vrot.slane %v1122_v58, 2  ;;  %v1318_v48 = vsel %vm549_vm5, %v1316_v41, %v1098_v42  ;;  %v1264_v11 = vmax.f32 %v1262_v40, %v1263_v32  ;;  %v1150_v61 = vmax.f32 %v1148_v8, %v1149_v18 }
 0x183   :  { %v1278_v7 = vmax.f32 %v1276_v22, %v1277_v36  ;;  %v1237_v13 = vrot.slane %v1236_v21, 1  ;;  %v1137_v51 = vrot.slane %v1136_v45, 2  ;;  %v1163_v59 = vrot.slane %v1162_v60, 4 }
 0x184   :  { %v1124_v39 = vmax.f32 %v1122_v58, %v1123_v6  ;;  %v1251_v2 = vrot.slane %v1250_v20, 1  ;;  %v1265_v28 = vrot.slane %v1264_v11, 1  ;;  %v1151_v57 = vrot.slane %v1150_v61, 2 }
 0x185   :  { %v1279_v31 = vrot.slane %v1278_v7, 1  ;;  %v1138_v47 = vmax.f32 %v1136_v45, %v1137_v51  ;;  %v1164_v62 = vmax.f32 %v1162_v60, %v1163_v59  ;;  %v1287_v49 = vsel %vm1286_vm12, %v1284_v52, %v3168_v3  ;;  %v3678_v59 = vld [vmem:[#allocation14_spill] sm:$0xff] }
 0x186   :  { %v1125_v46 = vrot.slane %v1124_v39, 1  ;;  %v1320_v15 = vsel %vm1286_vm12, %v1318_v48, %v1112_v55  ;;  %v1152_v33 = vmax.f32 %v1150_v61, %v1151_v57  ;;  %v1290_v63 = vsel %vm1289_vm13, %v1287_v49, %v3171_v4  ;;  %v3675_v48 = vld [vmem:[#allocation6_spill] sm:$0xff]  ;;  %v3681_v57 = vld [vmem:[#allocation9_spill] sm:$0xff] }
 0x187   :  { %v1280_v42 = vmax.f32 %v1278_v7, %v1279_v31  ;;  %v3392_v41 = vmax.f32 %v1236_v21, %v1237_v13  ;;  %v1139_v54 = vrot.slane %v1138_v47, 1  ;;  %v1165_v40 = vrot.slane %v1164_v62, 2  ;;  %v3680_v31 = vld [vmem:[#allocation13_spill] sm:$0xff] }
 0x188   :  { %v1293_v22 = vsel %vm1292_vm14, %v1290_v63, %v3195_v23  ;;  %v3396_v58 = vmax.f32 %v1250_v20, %v1251_v2  ;;  %v3398_v19 = vmax.f32 %v1264_v11, %v1265_v28  ;;  %v1153_v8 = vrot.slane %v1152_v33, 1  ;;  %v3676_v11 = vld [vmem:[#allocation7_spill] sm:$0xff] }
 0x189   :  { %v1301_v3 = vsel %vm282_vm0, %v3199_v56, %v3134_v44  ;;  %v3404_v52 = vsel %vm1298_vm11, %v1280_v42, 0.0  ;;  %v1126_v4 = vmax.f32 %v1124_v39, %v1125_v46  ;;  %v1166_v21 = vmax.f32 %v1164_v62, %v1165_v40  ;;  %v3682_v62 = vld [vmem:[#allocation16_spill] sm:$0xff]  ;;  %v3683_v42 = vld [vmem:[#allocation10_spill] sm:$0xff] }
 0x18a   :  { %v1303_v32 = vsel %vm549_vm5, %v1301_v3, %v3140_v16  ;;  %v1140_v36 = vmax.f32 %v1138_v47, %v1139_v54  ;;  %v1296_v23 = vsel %vm1295_vm15, %v1293_v22, %v3353_v38  ;;  %v1321_v18 = vsel %vm1289_vm13, %v3241_v50, %v3261_v24  ;;  %v3684_v54 = vld [vmem:[#allocation18_spill] sm:$0xff]  ;;  %v3685_v22 = vld [vmem:[#allocation11_spill] sm:$0xff] }
 0x18b   :  { %v1305_v20 = vsel %vm1286_vm12, %v1303_v32, %v3142_v9  ;;  %v1167_v44 = vrot.slane %v1166_v21, 1  ;;  %v1323_v55 = vsel %vm1292_vm14, %v1321_v18, %v3272_v53  ;;  %v1331_v16 = vsel %vm549_vm5, %v3285_v29, %v3218_v25  ;;  %v3673_v25 = vld [vmem:[#allocation5_spill] sm:$0xff]  ;;  %v3688_v32 = vld [vmem:[#allocation12_spill] sm:$0xff] }
 0x18c   :  { %v1307_v56 = vsel %vm1289_vm13, %v1305_v20, %v3151_v0  ;;  %v1154_v6 = vmax.f32 %v1152_v33, %v1153_v8  ;;  %v1325_v9 = vsel %vm1295_vm15, %v1323_v55, %v3281_v43  ;;  %v1333_v50 = vsel %vm1286_vm12, %v1331_v16, %v3220_v30  ;;  %v3686_v8 = vld [vmem:[#allocation8_spill] sm:$0xff] }
 0x18d   :  { %v1309_v38 = vsel %vm1292_vm14, %v1307_v56, %v3185_v26  ;;  %v1168_v24 = vmax.f32 %v1166_v21, %v1167_v44  ;;  %v1335_v53 = vsel %vm1289_vm13, %v1333_v50, %v3249_v12  ;;  %v1347_v45 = vrot.slane %v1325_v9, 7  ;;  %v3689_v56 = vld [vmem:[#allocation17_spill] sm:$0xff] }
 0x18e   :  { %v1311_v0 = vsel %vm1295_vm15, %v1309_v38, %v3372_v27  ;;  %v3674_v29 = vrot.slane %v3673_v25, 1  ;;  %v1337_v43 = vsel %vm1292_vm14, %v1335_v53, %v3675_v48  ;;  %v3677_v7 = vrot.slane %v3322_v1, 1  ;;  %v2735_v38 = vld [vmem:[#allocation2 + $0xf8] sm:$0xff]  }
 0x18f   :  { %v3432_v60 = vpack.c.bf16 %v1311_v0, %v1296_v23  ;;  %v1328_v30 = vsel %vm1298_vm11, %v1168_v24, %v3358_v5  ;;  %v1339_v27 = vsel %vm1295_vm15, %v1337_v43, %v3676_v11  ;;  %v1285_v61 = vsel %vm549_vm5, %v3319_v14, %v3300_v10 }
 0x190   :  { %v1035_v26 = vmax.f32 %v3673_v25, %v3674_v29  ;;  %v916_v12 = vmax.f32 %v3322_v1, %v3677_v7  ;;  %v1348_v13 = vrot.slane %v1339_v27, 7  ;;  %v3679_v5 = vrot.slane %v3678_v59, 1  ;;  %v2714_v29 = vld [vmem:[#allocation2 + $0xe8] sm:$0xff]  }
 0x191   :  { %2601 = vmatprep.mubr.bf16.mxu0 %v3432_v60  ;;  %v1395_v51 = vshll.u32 %v3432_v60, 16  ;;  %v1330_v28 = vsel %vm282_vm0, %v1328_v30, %v3361_v35  ;;  %v1288_v1 = vsel %vm1286_vm12, %v1285_v61, %v3680_v31  ;;  %v1302_v10 = vsel %vm282_vm0, %v3356_v17, %v3681_v57  ;;  %v2712_v35 = vld [vmem:[#allocation2 + $0xf0] sm:$0xff]   ;;  %v2736_v31 = vld [vmem:[#allocation2 + $0xb8] sm:$0xff]   ;;  %v2717_v57 = vld [vmem:[#allocation2 + $0xa8] sm:$0xff]  }
 0x192   :  { %v1365_v39 = vsel %vm1298_vm11, %v1035_v26, %v1347_v45  ;;  %v1028_v2 = vmax.f32 %v3678_v59, %v3679_v5  ;;  %v1322_v14 = vsel %vm1289_vm13, %v1320_v15, %v1126_v4  ;;  %v1349_v46 = vsel %vm1298_vm11, %v1347_v45, %v1348_v13 }
 0x193   :  { %v1397_v47 = vrot.slane %v1395_v51, 1  ;;  %v1291_v49 = vsel %vm1289_vm13, %v1288_v1, %v3682_v62  ;;  %v1304_v33 = vsel %vm549_vm5, %v1302_v10, %v3683_v42  ;;  %v3468_v63 = vpack.c.bf16 %v1349_v46, %v1365_v39  ;;  %v3690_v39 = vld [vmem:[#allocation15_spill] sm:$0xff]  ;;  %v2718_v62 = vld [vmem:[#allocation2 + $0xd8] sm:$0xff]  }
 0x194   :  { %v1294_v40 = vsel %vm1292_vm14, %v1291_v49, %v3684_v54  ;;  %v1306_v17 = vsel %vm1286_vm12, %v1304_v33, %v3685_v22  ;;  %v3687_v15 = vrot.slane %v3686_v8, 7  ;;  %v1393_v4 = vshrl.u32 %v3432_v60, 16  ;;  %v2719_v54 = vld [vmem:[#allocation2 + $0xa0] sm:$0xff]   ;;  %v2720_v8 = vld [vmem:[#allocation2 + $0xd0] sm:$0xff]  }
 0x195   :  { %v1297_v21 = vsel %vm1295_vm15, %v1294_v40, %v916_v12  ;;  %v1308_v23 = vsel %vm1289_vm13, %v1306_v17, %v3688_v32  ;;  %2602 = vmatmul.mubr.bf16.vlgmr.msra.gmra.mxu0 %v3468_v63  ;;  %v1400_v18 = vshll.u32 %v3468_v63, 16  ;;  %v1404_v44 = vshrl.u32 %v3468_v63, 16 }
 0x196   :  { %v1367_v3 = vsel %vm1298_vm11, %v1348_v13, %v3687_v15  ;;  %v1310_v55 = vsel %vm1292_vm14, %v1308_v23, %v3689_v56  ;;  %v1324_v16 = vsel %vm1292_vm14, %v1322_v14, %v1140_v36  ;;  %2634 = vmatpush3.bf16.msra.mxu0 %v2735_v38  ;;  %v1332_v0 = vsel %vm549_vm5, %v1330_v28, %v3363_v37  ;;  %v2716_v13 = vld [vmem:[#allocation2 + $0xe0] sm:$0xff]   ;;  %v2721_v23 = vld [vmem:[#allocation2 + $0x98] sm:$0xff]  }
 0x197   :  { %v3481_v20 = vpack.c.bf16 %v1367_v3, %v1367_v3  ;;  %v1312_v9 = vsel %vm1295_vm15, %v1310_v55, %v1028_v2  ;;  %v1326_v24 = vsel %vm1295_vm15, %v1324_v16, %v1154_v6  ;;  %2635 = vmatprep.subr.bf16.mxu0 %v2712_v35  ;;  %v1398_v53 = vor.u32 %v1397_v47, %v1393_v4  ;;  %v2723_v16 = vld [vmem:[#allocation2 + $0x90] sm:$0xff]   ;;  %v2724_v38 = vld [vmem:[#allocation2 + $0xc0] sm:$0xff]  }
 0x198   :  { %v1402_v45 = vrot.slane %v1400_v18, 1  ;;  %v3494_v25 = vpack.c.bf16 %v1312_v9, %v1297_v21  ;;  %v1334_v36 = vsel %vm1286_vm12, %v1332_v0, %v3365_v34  ;;  %v1362_v26 = vrot.slane %v3404_v52, 7  ;;  %v2715_v34 = vld [vmem:[#allocation2 + $0xb0] sm:$0xff]  }
 0x199   :  { %v1408_v50 = vshll.u32 %v3481_v20, 16  ;;  %v1336_v6 = vsel %vm1289_vm13, %v1334_v36, %v3392_v41  ;;  %v1350_v43 = vrot.slane %v1326_v24, 7  ;;  %v1839_v27 = vrot.slane %v1393_v4, 1 }
 0x19a   :  { %v1403_v37 = vsel %vm1391_vm1, %v1398_v53, %v1402_v45  ;;  %v1406_v30 = vor.u32 %v1404_v44, %v1402_v45  ;;  %2605 = vmatprep.mubr.bf16.mxu0 %v3494_v25  ;;  %v1338_v11 = vsel %vm1292_vm14, %v1336_v6, %v3396_v58  ;;  %2636 = vmatpush3.bf16.msra.mxu0 %v2712_v35  ;;  %v1840_v7 = vrot.slane %v1395_v51, 2  ;;  %v2725_v45 = vld [vmem:[#allocation2 + $0x88] sm:$0xff]  }
 0x19b   :  { %v1410_v48 = vrot.slane %v1408_v50, 1  ;;  %2577 = vmatprep.mubr.bf16.mxu1 %v1403_v37  ;;  %v1340_v52 = vsel %vm1295_vm15, %v1338_v11, %v3398_v19  ;;  %v1842_v12 = vrot.slane %v1404_v44, 1  ;;  %v1843_v61 = vrot.slane %v1400_v18, 2  ;;  %2637 = vmatprep.subr.bf16.mxu0 %v2714_v29  ;;  %v2722_v44 = vld [vmem:[#allocation2 + $0xc8] sm:$0xff]  }
 0x19c   :  { %v3691_v59 = vrot.slane %v3690_v39, 1  ;;  %v1351_v2 = vrot.slane %v1340_v52, 7  ;;  %v1415_v58 = vshll.u32 %v3494_v25, 16  ;;  %v1841_v14 = vor.u32 %v1840_v7, %v1839_v27 }
 0x19d   :  { %v1411_v41 = vsel %vm1391_vm1, %v1406_v30, %v1410_v48  ;;  %v3514_v28 = vor.u32 %v1843_v61, %v1842_v12  ;;  %v1413_v42 = vshrl.u32 %v3494_v25, 16  ;;  %v1687_v15 = vrot.slane %v3468_v63, 1 }
 0x19e   :  { %v1042_v5 = vmax.f32 %v3690_v39, %v3691_v59  ;;  %2578 = vmatmul.mubr.bf16.vlgmr.msra.gmra.mxu1 %v1411_v41  ;;  %v1352_v19 = vsel %vm1298_vm11, %v1350_v43, %v1351_v2  ;;  %v1368_v1 = vsel %vm1298_vm11, %v1351_v2, %v1362_v26  ;;  %2638 = vmatpush3.bf16.msra.mxu0 %v2714_v29  ;;  %v1417_v46 = vrot.slane %v1415_v58, 1  ;;  %v2729_v2 = vld [vmem:[#allocation2 + $0x128] sm:$0xff]  }
 0x19f   :  { %2610 = vmatpush3.bf16.msra.mxu1 %v2736_v31  ;;  %v3523_v47 = vpack.c.bf16 %v1368_v1, %v1368_v1  ;;  %2639 = vmatprep.subr.bf16.mxu0 %v2716_v13  ;;  %v1845_v49 = vsel %vm1838_vm2, %v1841_v14, %v3514_v28  ;;  %v1686_v32 = vrot.slane %v3432_v60, 1  ;;  %v1846_v55 = vshrl.u32 %v3481_v20, 16  ;;  %v2731_v1 = vld [vmem:[#allocation2 + $0x118] sm:$0xff]  }
 0x1a0   :  { %v1366_v51 = vsel %vm1298_vm11, %v1042_v5, %v1350_v43  ;;  %2611 = vmatprep.subr.bf16.mxu1 %v2715_v34  ;;  %v1418_v40 = vor.u32 %v1417_v46, %v1413_v42  ;;  %v1849_v24 = vrot.slane %v1408_v50, 2  ;;  %v1852_v29 = vrot.slane %v1413_v42, 1  ;;  %v2726_v43 = vld [vmem:[#allocation2 + $0x80] sm:$0xff]  }
 0x1a1   :  { %v3519_v10 = vpack.c.bf16 %v1352_v19, %v1366_v51  ;;  %v1428_v35 = vshll.u32 %v3523_v47, 16  ;;  %v1688_v56 = vsel %vm1295_vm15, %v1686_v32, %v1687_v15  ;;  %v1848_v9 = vrot.slane %v1846_v55, 1  ;;  %v2730_v19 = vld [vmem:[#allocation2 + $0x120] sm:$0xff]  }
 0x1a2   :  { %2640 = vmatpush3.bf16.msra.mxu0 %v2716_v13  ;;  %v1853_v36 = vrot.slane %v1415_v58, 2  ;;  %v1859_v48 = vshrl.u32 %v3523_v47, 16  ;;  %v1689_v52 = vrot.slane %v3481_v20, 1  ;;  %v1691_v61 = vrot.slane %v3494_v25, 1  ;;  %v2728_v13 = vld [vmem:[#allocation2 + $0x130] sm:$0xff]  }
 0x1a3   :  { %2606 = vmatmul.mubr.bf16.gmra.mxu0 %v3519_v10  ;;  %v1420_v33 = vshll.u32 %v3519_v10, 16  ;;  %2612 = vmatpush3.bf16.msra.mxu1 %v2715_v34  ;;  %v1424_v17 = vshrl.u32 %v3519_v10, 16  ;;  %v1430_v21 = vrot.slane %v1428_v35, 1  ;;  %v1850_v26 = vor.u32 %v1849_v24, %v1848_v9  ;;  %v2727_v34 = vld [vmem:[#allocation2 + $0x138] sm:$0xff]  }
 0x1a4   :  { %2649 = vmatprep.mubr.bf16.mxu0 %v1845_v49  ;;  %2613 = vmatprep.subr.bf16.mxu1 %v2717_v57  ;;  %v1854_v50 = vor.u32 %v1853_v36, %v1852_v29  ;;  %v1861_v30 = vrot.slane %v1859_v48, 1  ;;  %v1862_v11 = vrot.slane %v1428_v35, 2  ;;  %v1692_v7 = vrot.slane %v3519_v10, 1 }
 0x1a5   :  { %v1422_v22 = vrot.slane %v1420_v33, 1  ;;  %2641 = vmatprep.subr.bf16.mxu0 %v2718_v62  ;;  %v1855_v0 = vrot.slane %v1424_v17, 1  ;;  %v1856_v53 = vrot.slane %v1420_v33, 2  ;;  %v1851_v37 = vsel %vm1838_vm2, %v3514_v28, %v1850_v26 }
 0x1a6   :  { %2642 = vmatpush3.bf16.msra.mxu0 %v2718_v62  ;;  %v1863_v12 = vor.u32 %v1862_v11, %v1861_v30  ;;  %v1690_v41 = vsel %vm1295_vm15, %v1687_v15, %v1689_v52  ;;  %v1693_v39 = vsel %vm1295_vm15, %v1691_v61, %v1692_v7  ;;  %v1694_v5 = vrot.slane %v3523_v47, 1 }
 0x1a7   :  { %v1423_v3 = vsel %vm1391_vm1, %v1418_v40, %v1422_v22  ;;  %v1426_v4 = vor.u32 %v1424_v17, %v1422_v22  ;;  %2614 = vmatpush3.bf16.msra.mxu1 %v2717_v57  ;;  %2643 = vmatprep.subr.bf16.mxu0 %v2720_v8  ;;  %v1857_v6 = vor.u32 %v1856_v53, %v1855_v0  ;;  %v2009_v58 = vrot.slane %v3468_v63, 2  ;;  %v2732_v57 = vld [vmem:[#allocation2 + $0x110] sm:$0xff]   ;;  %v2733_v63 = vld [vmem:[#allocation2 + $0x108] sm:$0xff]  }
 0x1a8   :  { %2581 = vmatprep.mubr.bf16.mxu1 %v1423_v3  ;;  %2615 = vmatprep.subr.bf16.mxu1 %v2719_v54  ;;  %v2008_v28 = vrot.slane %v3432_v60, 2  ;;  %v1695_v31 = vsel %vm1295_vm15, %v1692_v7, %v1694_v5  ;;  %v2734_v60 = vld [vmem:[#allocation2 + $0x100] sm:$0xff]   ;;  %v2011_v14 = vrot.slane %v3481_v20, 2  ;;  %v2014_v46 = vrot.slane %v3519_v10, 2 }
 0x1a9   :  { %v1431_v18 = vsel %vm1391_vm1, %v1426_v4, %v1430_v21  ;;  %v1858_v27 = vsel %vm1838_vm2, %v1854_v50, %v1857_v6  ;;  %v1864_v59 = vsel %vm1838_vm2, %v1857_v6, %v1863_v12  ;;  %v2013_v62 = vrot.slane %v3494_v25, 2 }
 0x1aa   :  { %2582 = vmatmul.mubr.bf16.gmra.mxu1 %v1431_v18  ;;  %2644 = vmatpush3.bf16.msra.mxu0 %v2720_v8  ;;  %v2010_v51 = vsel %vm1292_vm14, %v2008_v28, %v2009_v58  ;;  %v2012_v49 = vsel %vm1292_vm14, %v2009_v58, %v2011_v14  ;;  %v2016_v33 = vrot.slane %v3523_v47, 2 }
 0x1ab   :  { %2625 = vmatprep.mubr.bf16.mxu1 %v1688_v56  ;;  %2616 = vmatpush3.bf16.msra.mxu1 %v2719_v54  ;;  %v2015_v42 = vsel %vm1292_vm14, %v2013_v62, %v2014_v46 }
 0x1ac   :  { %2617 = vmatprep.subr.bf16.mxu1 %v2721_v23  ;;  %2645 = vmatprep.subr.bf16.mxu0 %v2722_v44  ;;  %v2017_v35 = vsel %vm1292_vm14, %v2014_v46, %v2016_v33 }
 0x1ae   :  { %2646 = vmatpush3.bf16.msra.mxu0 %v2722_v44 }
 0x1af   :  { %2618 = vmatpush3.bf16.msra.mxu1 %v2721_v23  ;;  %2647 = vmatprep.subr.bf16.mxu0 %v2724_v38 }
 0x1b0   :  { %2619 = vmatprep.subr.bf16.mxu1 %v2723_v16 }
 0x1b2   :  { %2648 = vmatpush3.bf16.msra.mxu0 %v2724_v38 }
 0x1b3   :  { %2620 = vmatpush3.bf16.msra.mxu1 %v2723_v16 }
 0x1b4   :  { %2621 = vmatprep.subr.bf16.mxu1 %v2725_v45 }
 0x1b5   :  { %2650 = vmatmul.mubr.bf16.vlgmr.msra.gmra.mxu0 %v1851_v37 }
 0x1b6   :  { %2653 = vmatprep.mubr.bf16.mxu0 %v1858_v27 }
 0x1b7   :  { %2622 = vmatpush3.bf16.msra.mxu1 %v2725_v45 }
 0x1b8   :  { %2623 = vmatprep.subr.bf16.mxu1 %v2726_v43 }
 0x1bb   :  { %2624 = vmatpush3.bf16.msra.mxu1 %v2726_v43 }
 0x1bc   :  { %2657 = vmatprep.subr.bf16.mxu1 %v2727_v34 }
 0x1bd   :  { %2654 = vmatmul.mubr.bf16.gmra.mxu0 %v1864_v59 }
 0x1be   :  { %2626 = vmatmul.mubr.bf16.vlgmr.msra.gmra.mxu1 %v1690_v41 }
 0x1bf   :  { %2629 = vmatprep.mubr.bf16.mxu1 %v1693_v39  ;;  %2658 = vmatpush3.bf16.msra.mxu1 %v2727_v34  ;;  %v3575_v34 = vld [vmem:[%s3643_s5] ss:$0 sm:$0xff] }
 0x1c0   :  { %2659 = vmatprep.subr.bf16.mxu1 %v2728_v13 }
 0x1c3   :  { %2660 = vmatpush3.bf16.msra.mxu1 %v2728_v13  ;;  %v3580_v13 = vld [vmem:[%s3644_s6] ss:$0 sm:$0xff] }
 0x1c4   :  { %2661 = vmatprep.subr.bf16.mxu1 %v2729_v2 }
 0x1c6   :  { %2630 = vmatmul.mubr.bf16.gmra.mxu1 %v1695_v31 }
 0x1c7   :  { %2673 = vmatprep.mubr.bf16.mxu1 %v2010_v51  ;;  %2662 = vmatpush3.bf16.msra.mxu1 %v2729_v2 }
 0x1c8   :  { %2663 = vmatprep.subr.bf16.mxu1 %v2730_v19 }
 0x1cb   :  { %2664 = vmatpush3.bf16.msra.mxu1 %v2730_v19 }
 0x1cc   :  { %2665 = vmatprep.subr.bf16.mxu1 %v2731_v1 }
 0x1cf   :  { %2666 = vmatpush3.bf16.msra.mxu1 %v2731_v1 }
 0x1d0   :  { %2667 = vmatprep.subr.bf16.mxu1 %v2732_v57 }
 0x1d3   :  { %2668 = vmatpush3.bf16.msra.mxu1 %v2732_v57 }
 0x1d4   :  { %2669 = vmatprep.subr.bf16.mxu1 %v2733_v63 }
 0x1d7   :  { %2670 = vmatpush3.bf16.msra.mxu1 %v2733_v63 }
 0x1d8   :  { %2671 = vmatprep.subr.bf16.mxu1 %v2734_v60 }
 0x1db   :  { %2672 = vmatpush3.bf16.msra.mxu1 %v2734_v60 }
 0x1de   :  { %2674 = vmatmul.mubr.bf16.vlgmr.msra.gmra.mxu1 %v2012_v49 }
 0x1df   :  { %2677 = vmatprep.mubr.bf16.mxu1 %v2015_v42 }
 0x1e6   :  { %2678 = vmatmul.mubr.bf16.gmra.mxu1 %v2017_v35 }
 0x255   :  { %v2603_v8 = vpop.f32.mrf.mxu0 }
 0x257   :  { %v1648_v25 = vpop.f32.mrf.mxu0 }
 0x259   :  { %v2604_v4 = vpop.f32.mrf.mxu0 }
 0x25b   :  { %v1651_v32 = vpop.f32.mrf.mxu0 }
 0x25e   :  { %v2579_v54 = vpop.f32.mrf.mxu1 }
 0x25f   :  { %v1657_v0 = vadd.f32 %v2603_v8, %v2579_v54 }
 0x260   :  { %v1535_v40 = vpop.f32.mrf.mxu1 }
 0x261   :  { %v1649_v29 = vadd.f32 %v1648_v25, %v1535_v40 }
 0x262   :  { %v2580_v22 = vpop.f32.mrf.mxu1 }
 0x263   :  { %v2607_v18 = vpop.f32.mrf.mxu0  ;;  %v1660_v26 = vadd.f32 %v2604_v4, %v2580_v22 }
 0x264   :  { %v1538_v20 = vpop.f32.mrf.mxu1 }
 0x265   :  { %v1664_v44 = vpop.f32.mrf.mxu0  ;;  %v1652_v30 = vadd.f32 %v1651_v32, %v1538_v20 }
 0x267   :  { %v2608_v55 = vpop.f32.mrf.mxu0 }
 0x269   :  { %v1667_v38 = vpop.f32.mrf.mxu0 }
 0x26a   :  { %v2583_v17 = vpop.f32.mrf.mxu1 }
 0x26b   :  { %v1673_v11 = vadd.f32 %v2607_v18, %v2583_v17 }
 0x26c   :  { %v1551_v10 = vpop.f32.mrf.mxu1 }
 0x26d   :  { %v1665_v1 = vadd.f32 %v1664_v44, %v1551_v10 }
 0x26e   :  { %v2584_v15 = vpop.f32.mrf.mxu1 }
 0x26f   :  { %v1676_v42 = vadd.f32 %v2608_v55, %v2584_v15 }
 0x270   :  { %v3564_v3 = vpop.f32.mrf.mxu1 }
 0x271   :  { %v1668_v32 = vadd.f32 %v1667_v38, %v3564_v3 }
 0x275   :  { %v2651_v9 = vpop.f32.mrf.mxu0 }
 0x277   :  { %v1968_v53 = vpop.f32.mrf.mxu0 }
 0x279   :  { %v2652_v48 = vpop.f32.mrf.mxu0 }
 0x27b   :  { %v1971_v52 = vpop.f32.mrf.mxu0 }
 0x27d   :  { %v2655_v28 = vpop.f32.mrf.mxu0 }
 0x27e   :  { %v2627_v21 = vpop.f32.mrf.mxu1 }
 0x27f   :  { %v1832_v36 = vadd.f32 %v2627_v21, %v1657_v0 }
 0x280   :  { %v1799_v23 = vpop.f32.mrf.mxu1 }
 0x281   :  { %v1830_v6 = vadd.f32 %v1799_v23, %v1649_v29  ;;  %v2001_v37 = vadd.f32 %v2651_v9, %v1832_v36 }
 0x282   :  { %v2628_v47 = vpop.f32.mrf.mxu1 }
 0x283   :  { %v1833_v50 = vadd.f32 %v2628_v47, %v1660_v26  ;;  %v1999_v12 = vadd.f32 %v1968_v53, %v1830_v6  ;;  %v1984_v47 = vpop.f32.mrf.mxu0 }
 0x284   :  { %v1802_v56 = vpop.f32.mrf.mxu1 }
 0x285   :  { %v1831_v61 = vadd.f32 %v1802_v56, %v1652_v30  ;;  %v2002_v2 = vadd.f32 %v2652_v48, %v1833_v50 }
 0x286   :  { %v2631_v16 = vpop.f32.mrf.mxu1 }
 0x287   :  { %v1836_v41 = vadd.f32 %v2631_v16, %v1673_v11  ;;  %v2000_v57 = vadd.f32 %v1971_v52, %v1831_v61  ;;  %v2656_v11 = vpop.f32.mrf.mxu0 }
 0x288   :  { %v3566_v24 = vpop.f32.mrf.mxu1 }
 0x289   :  { %v2005_v60 = vadd.f32 %v2655_v28, %v1836_v41  ;;  %v1834_v36 = vadd.f32 %v3566_v24, %v1665_v1  ;;  %v1987_v1 = vpop.f32.mrf.mxu0 }
 0x28a   :  { %v3568_v45 = vpop.f32.mrf.mxu1 }
 0x28c   :  { %v3570_v43 = vpop.f32.mrf.mxu1 }
 0x28d   :  { %v1835_v61 = vadd.f32 %v3570_v43, %v1668_v32 }
 0x29e   :  { %v2675_v27 = vpop.f32.mrf.mxu1 }
 0x29f   :  { %v2154_v7 = vadd.f32 %v2675_v27, %v2001_v37  ;;  %v1837_v27 = vadd.f32 %v3568_v45, %v1676_v42  ;;  %v2003_v45 = vadd.f32 %v1984_v47, %v1834_v36 }
 0x2a0   :  { %v2121_v39 = vpop.f32.mrf.mxu1 }
 0x2a1   :  { %v2169_v59 = vmul.f32 %v3575_v34, %v2154_v7  ;;  %v2152_v5 = vadd.f32 %v2121_v39, %v1999_v12 }
 0x2a2   :  { %v2676_v58 = vpop.f32.mrf.mxu1 }
 0x2a3   :  { %v2184_v31 = vadd.f32 %v3580_v13, %v2169_v59  ;;  %v2167_v19 = vmul.f32 %v3575_v34, %v2152_v5  ;;  %v2155_v51 = vadd.f32 %v2676_v58, %v2002_v2 }
 0x2a4   :  { %v2124_v63 = vpop.f32.mrf.mxu1 }
 0x2a5   :  { %v2247_v14 = vsel %vm1286_vm12, %v2184_v31, -inf  ;;  %v2261_v46 = vsel %vm2204_vm3, %v2184_v31, -inf  ;;  %v2182_v62 = vadd.f32 %v3580_v13, %v2167_v19  ;;  %v2170_v49 = vmul.f32 %v3575_v34, %v2155_v51 }
 0x2a6   :  { %v2248_v33 = vrot.slane %v2247_v14, 4  ;;  %v2262_v35 = vrot.slane %v2261_v46, 4  ;;  %v2153_v54 = vadd.f32 %v2124_v63, %v2000_v57  ;;  %v2679_v40 = vpop.f32.mrf.mxu1  ;;  %v2006_v63 = vadd.f32 %v2656_v11, %v1837_v27 }
 0x2a7   :  { %v2190_v22 = vsel %vm1286_vm12, %v2182_v62, -inf  ;;  %v2205_v20 = vsel %vm2204_vm3, %v2182_v62, -inf  ;;  %v2185_v17 = vadd.f32 %v3580_v13, %v2170_v49  ;;  %v2158_v10 = vadd.f32 %v2679_v40, %v2005_v60 }
 0x2a8   :  { %v2249_v8 = vmax.f32 %v2247_v14, %v2248_v33  ;;  %v2263_v25 = vmax.f32 %v2261_v46, %v2262_v35  ;;  %v2191_v4 = vrot.slane %v2190_v22, 4  ;;  %v2206_v21 = vrot.slane %v2205_v20, 4  ;;  %v2137_v48 = vpop.f32.mrf.mxu1 }
 0x2a9   :  { %v2275_v23 = vsel %vm1286_vm12, %v2185_v17, -inf  ;;  %v2289_v15 = vsel %vm2204_vm3, %v2185_v17, -inf  ;;  %v2168_v18 = vmul.f32 %v3575_v34, %v2153_v54  ;;  %v2173_v29 = vmul.f32 %v3575_v34, %v2158_v10 }
 0x2aa   :  { %v2250_v44 = vrot.slane %v2249_v8, 2  ;;  %v2264_v56 = vrot.slane %v2263_v25, 2  ;;  %v2192_v55 = vmax.f32 %v2190_v22, %v2191_v4  ;;  %v2207_v16 = vmax.f32 %v2205_v20, %v2206_v21  ;;  %v2680_v58 = vpop.f32.mrf.mxu1 }
 0x2ab   :  { %v2276_v9 = vrot.slane %v2275_v23, 4  ;;  %v2290_v0 = vrot.slane %v2289_v15, 4  ;;  %v2183_v53 = vadd.f32 %v3580_v13, %v2168_v18  ;;  %v2188_v39 = vadd.f32 %v3580_v13, %v2173_v29 }
 0x2ac   :  { %v2251_v3 = vmax.f32 %v2249_v8, %v2250_v44  ;;  %v2193_v38 = vrot.slane %v2192_v55, 2  ;;  %v2208_v26 = vrot.slane %v2207_v16, 2  ;;  %v2265_v52 = vmax.f32 %v2263_v25, %v2264_v56  ;;  %v2140_v35 = vpop.f32.mrf.mxu1 }
 0x2ad   :  { %v2277_v6 = vmax.f32 %v2275_v23, %v2276_v9  ;;  %v2291_v50 = vmax.f32 %v2289_v15, %v2290_v0  ;;  %v2219_v37 = vsel %vm1286_vm12, %v2183_v53, -inf  ;;  %v2233_v30 = vsel %vm2204_vm3, %v2183_v53, -inf }
 0x2ae   :  { %v2194_v7 = vmax.f32 %v2192_v55, %v2193_v38  ;;  %v2209_v12 = vmax.f32 %v2207_v16, %v2208_v26  ;;  %v2220_v41 = vrot.slane %v2219_v37, 4  ;;  %v2234_v24 = vrot.slane %v2233_v30, 4 }
 0x2af   :  { %v2252_v59 = vrot.slane %v2251_v3, 1  ;;  %v2278_v5 = vrot.slane %v2277_v6, 2  ;;  %v2292_v2 = vrot.slane %v2291_v50, 2  ;;  %v2266_v57 = vrot.slane %v2265_v52, 1 }
 0x2b0   :  { %v2195_v28 = vrot.slane %v2194_v7, 1  ;;  %v2210_v31 = vrot.slane %v2209_v12, 1  ;;  %v2221_v19 = vmax.f32 %v2219_v37, %v2220_v41  ;;  %v2235_v51 = vmax.f32 %v2233_v30, %v2234_v24 }
 0x2b1   :  { %v2254_v43 = vsel %vm1286_vm12, %v2188_v39, -inf  ;;  %v2004_v46 = vadd.f32 %v1987_v1, %v1835_v61  ;;  %v2253_v62 = vmax.f32 %v2251_v3, %v2252_v59  ;;  %v2279_v49 = vmax.f32 %v2277_v6, %v2278_v5 }
 0x2b2   :  { %v2222_v60 = vrot.slane %v2221_v19, 2  ;;  %v2236_v14 = vrot.slane %v2235_v51, 2  ;;  %v2293_v42 = vmax.f32 %v2291_v50, %v2292_v2  ;;  %v2156_v33 = vadd.f32 %v2137_v48, %v2003_v45 }
 0x2b3   :  { %v2196_v54 = vmax.f32 %v2194_v7, %v2195_v28  ;;  %v2211_v40 = vmax.f32 %v2209_v12, %v2210_v31  ;;  %v2267_v17 = vmax.f32 %v2265_v52, %v2266_v57  ;;  %v2255_v10 = vrot.slane %v2254_v43, 4 }
 0x2b4   :  { %v2223_v22 = vmax.f32 %v2221_v19, %v2222_v60  ;;  %v2237_v20 = vmax.f32 %v2235_v51, %v2236_v14  ;;  %v2171_v8 = vmul.f32 %v3575_v34, %v2156_v33  ;;  %v2159_v25 = vadd.f32 %v2680_v58, %v2006_v63 }
 0x2b5   :  { %v2268_v32 = vsel %vm2204_vm3, %v2188_v39, -inf  ;;  %v2157_v23 = vadd.f32 %v2140_v35, %v2004_v46  ;;  %v2280_v15 = vrot.slane %v2279_v49, 1  ;;  %v2294_v18 = vrot.slane %v2293_v42, 1 }
 0x2b6   :  { %v2224_v4 = vrot.slane %v2223_v22, 1  ;;  %v2238_v21 = vrot.slane %v2237_v20, 1  ;;  %v2186_v47 = vadd.f32 %v3580_v13, %v2171_v8  ;;  %v2174_v44 = vmul.f32 %v3575_v34, %v2159_v25 }
 0x2b7   :  { %v2303_v56 = vsel %vm1298_vm11, %v2196_v54, %v2211_v40  ;;  %v2172_v9 = vmul.f32 %v3575_v34, %v2157_v23  ;;  %v2256_v0 = vmax.f32 %v2254_v43, %v2255_v10  ;;  %v2269_v53 = vrot.slane %v2268_v32, 4 }
 0x2b8   :  { %v2225_v55 = vmax.f32 %v2223_v22, %v2224_v4  ;;  %v2239_v16 = vmax.f32 %v2237_v20, %v2238_v21  ;;  %v2197_v29 = vsel %vm1286_vm12, %v2186_v47, -inf  ;;  %v2212_v36 = vsel %vm2204_vm3, %v2186_v47, -inf }
 0x2b9   :  { %v2198_v38 = vrot.slane %v2197_v29, 4  ;;  %v2213_v26 = vrot.slane %v2212_v36, 4  ;;  %v2189_v48 = vadd.f32 %v3580_v13, %v2174_v44  ;;  %v2281_v6 = vmax.f32 %v2279_v49, %v2280_v15 }
 0x2ba   :  { %v2305_v3 = vsel %vm282_vm0, %v2303_v56, %v2225_v55  ;;  %v2295_v50 = vmax.f32 %v2293_v42, %v2294_v18  ;;  %v2187_v30 = vadd.f32 %v3580_v13, %v2172_v9  ;;  %v2257_v12 = vrot.slane %v2256_v0, 2 }
 0x2bb   :  { %v2307_v37 = vsel %vm549_vm5, %v2305_v3, %v2239_v16  ;;  %v2199_v11 = vmax.f32 %v2197_v29, %v2198_v38  ;;  %v2214_v27 = vmax.f32 %v2212_v36, %v2213_v26  ;;  %v2282_v52 = vsel %vm1286_vm12, %v2189_v48, -inf }
 0x2bc   :  { %v2309_v34 = vsel %vm1286_vm12, %v2307_v37, %v2253_v62  ;;  %v2270_v61 = vmax.f32 %v2268_v32, %v2269_v53  ;;  %v2283_v41 = vrot.slane %v2282_v52, 4  ;;  %v2296_v5 = vsel %vm2204_vm3, %v2189_v48, -inf }
 0x2bd   :  { %v2311_v7 = vsel %vm1289_vm13, %v2309_v34, %v2267_v17  ;;  %v2200_v39 = vrot.slane %v2199_v11, 2  ;;  %v2215_v59 = vrot.slane %v2214_v27, 2  ;;  %v2297_v58 = vrot.slane %v2296_v5, 4 }
 0x2be   :  { %v2313_v24 = vsel %vm1292_vm14, %v2311_v7, %v2281_v6  ;;  %v2284_v13 = vmax.f32 %v2282_v52, %v2283_v41  ;;  %v2226_v28 = vsel %vm1286_vm12, %v2187_v30, -inf  ;;  %v2240_v1 = vsel %vm2204_vm3, %v2187_v30, -inf }
 0x2bf   :  { %v2315_v2 = vsel %vm1295_vm15, %v2313_v24, %v2295_v50  ;;  %v2201_v31 = vmax.f32 %v2199_v11, %v2200_v39  ;;  %v2216_v19 = vmax.f32 %v2214_v27, %v2215_v59  ;;  %v2227_v51 = vrot.slane %v2226_v28, 4 }
 0x2c0   :  { %2317 = vst [vmem:[%s3645_s7] sm:$0xff] %v2315_v2  ;;  %v2271_v57 = vrot.slane %v2270_v61, 2  ;;  %v2298_v45 = vmax.f32 %v2296_v5, %v2297_v58  ;;  %v2241_v63 = vrot.slane %v2240_v1, 4  ;;  %v2285_v60 = vrot.slane %v2284_v13, 2 }
 0x2c1   :  { %v2228_v14 = vmax.f32 %v2226_v28, %v2227_v51  ;;  %v2202_v43 = vrot.slane %v2201_v31, 1  ;;  %v2217_v46 = vrot.slane %v2216_v19, 1  ;;  %v2258_v42 = vmax.f32 %v2256_v0, %v2257_v12 }
 0x2c2   :  { %v2299_v62 = vrot.slane %v2298_v45, 2  ;;  %v2242_v49 = vmax.f32 %v2240_v1, %v2241_v63  ;;  %v2272_v35 = vmax.f32 %v2270_v61, %v2271_v57  ;;  %v2286_v40 = vmax.f32 %v2284_v13, %v2285_v60 }
 0x2c3   :  { %v2229_v33 = vrot.slane %v2228_v14, 2  ;;  %v2203_v20 = vmax.f32 %v2201_v31, %v2202_v43  ;;  %v2218_v17 = vmax.f32 %v2216_v19, %v2217_v46  ;;  %v2259_v25 = vrot.slane %v2258_v42, 1 }
 0x2c4   :  { %v2243_v54 = vrot.slane %v2242_v49, 2  ;;  %v2300_v10 = vmax.f32 %v2298_v45, %v2299_v62  ;;  %v2273_v21 = vrot.slane %v2272_v35, 1  ;;  %v2287_v23 = vrot.slane %v2286_v40, 1 }
 0x2c5   :  { %v2230_v22 = vmax.f32 %v2228_v14, %v2229_v33  ;;  %v2304_v18 = vsel %vm1298_vm11, %v2203_v20, %v2218_v17  ;;  %v2260_v56 = vmax.f32 %v2258_v42, %v2259_v25 }
 0x2c6   :  { %v2244_v8 = vmax.f32 %v2242_v49, %v2243_v54  ;;  %v2301_v47 = vrot.slane %v2300_v10, 1  ;;  %v2274_v16 = vmax.f32 %v2272_v35, %v2273_v21  ;;  %v2288_v0 = vmax.f32 %v2286_v40, %v2287_v23 }
 0x2c7   :  { %v2231_v4 = vrot.slane %v2230_v22, 1 }
 0x2c8   :  { %v2245_v32 = vrot.slane %v2244_v8, 1  ;;  %v2302_v29 = vmax.f32 %v2300_v10, %v2301_v47 }
 0x2c9   :  { %v2232_v15 = vmax.f32 %v2230_v22, %v2231_v4 }
 0x2ca   :  { %v2246_v44 = vmax.f32 %v2244_v8, %v2245_v32 }
 0x2cb   :  { %v2306_v55 = vsel %vm282_vm0, %v2304_v18, %v2232_v15 }
 0x2cc   :  { %v2308_v9 = vsel %vm549_vm5, %v2306_v55, %v2246_v44 }
 0x2cd   :  { %v2310_v53 = vsel %vm1286_vm12, %v2308_v9, %v2260_v56 }
 0x2ce   :  { %v2312_v36 = vsel %vm1289_vm13, %v2310_v53, %v2274_v16 }
 0x2cf   :  { %v2314_v3 = vsel %vm1292_vm14, %v2312_v36, %v2288_v0 }
 0x2d0   :  { %v2316_v38 = vsel %vm1295_vm15, %v2314_v3, %v2302_v29 }
 0x2d1   :  { %2318 = vst [vmem:[%s3645_s7 + $0x8] sm:$0xff] %v2316_v38 }
 0x2d2   :  { %2323 = vsyncpa [#allocation3], 1 }

</bundles_post_ra>
